<compile_context>
chip_gen: v5e
topology: v5e:2x2
jax: 0.10.0
libtpu: 0.0.40
codegen_flags: <defaults>
</compile_context>

<pallas_src>
import functools

import jax
import jax.numpy as jnp
from jax.experimental import pallas as pl
from jax.experimental.pallas import tpu as pltpu


# ----------------------------- helpers ---------------------------------------


def _round_up(v, m):
    return ((v + m - 1) // m) * m


def _pick_tile(total, pref, unit):
    """Largest multiple of `unit` that divides `total` and is <= pref (>= unit)."""
    best = unit
    t = unit
    limit = min(total, max(pref, unit))
    while t <= limit:
        if total % t == 0:
            best = t
        t += unit
    return best


# <= 48 MiB: inside v7x's 64 MiB physical VMEM, above v5e's 16 MiB scoped default.
_VMEM_LIMIT = 48 * 1024 * 1024


# ----------------------------- Pallas kernels --------------------------------


def _matmul_bias_kernel(a_ref, b_ref, bias_ref, o_ref, acc_ref):
    """o = a @ b + bias; f32 VMEM accumulation over the K grid axis."""

    @pl.when(pl.program_id(2) == 0)
    def _init():
        acc_ref[...] = jnp.zeros_like(acc_ref)

    acc_ref[...] += jnp.dot(
        a_ref[...], b_ref[...], preferred_element_type=jnp.float32
    )

    @pl.when(pl.program_id(2) == pl.num_programs(2) - 1)
    def _finalize():
        o_ref[...] = (acc_ref[...] + bias_ref[...]).astype(o_ref.dtype)


def _bsr_spmm_kernel(nnz_ref, blk_ref, a_ref, b_ref, o_ref, acc_ref):
    """Block-sparse o = a @ b (no bias).

    blk_ref[i, k] (scalar-prefetched, also used by the index_maps) selects the
    k-th nonzero column block of row-tile i; for k >= nnz_ref[i] the entry
    repeats the last valid block (DMA elided by the pipeline) and the MXU work
    is skipped here.
    """
    i = pl.program_id(0)
    k = pl.program_id(2)

    @pl.when(k == 0)
    def _init():
        acc_ref[...] = jnp.zeros_like(acc_ref)

    @pl.when(k < nnz_ref[i])
    def _accum():
        acc_ref[...] += jnp.dot(
            a_ref[...], b_ref[...], preferred_element_type=jnp.float32
        )

    @pl.when(k == pl.num_programs(2) - 1)
    def _finalize():
        o_ref[...] = acc_ref[...].astype(o_ref.dtype)


# ----------------------------- wrappers ---------------------------------------


def _dense_matmul_bias(a, b, bias, *, tm, tn, tk, out_dtype):
    """y = a @ b + bias on tile-aligned inputs (a:[M,K], b:[K,N], bias:[1,N])."""
    m, k = a.shape
    k2, n = b.shape
    assert k == k2 and m % tm == 0 and k % tk == 0 and n % tn == 0, (a.shape, b.shape)

    return pl.pallas_call(
        _matmul_bias_kernel,
        out_shape=jax.ShapeDtypeStruct((m, n), out_dtype),
        grid_spec=pltpu.PrefetchScalarGridSpec(
            num_scalar_prefetch=0,
            grid=(m // tm, n // tn, k // tk),
            in_specs=[
                pl.BlockSpec((tm, tk), lambda i, j, kk: (i, kk)),
                pl.BlockSpec((tk, tn), lambda i, j, kk: (kk, j)),
                pl.BlockSpec((1, tn), lambda i, j, kk: (0, j)),
            ],
            out_specs=pl.BlockSpec((tm, tn), lambda i, j, kk: (i, j)),
            scratch_shapes=[pltpu.VMEM((tm, tn), jnp.float32)],
        ),
        compiler_params=pltpu.CompilerParams(
            dimension_semantics=("parallel", "parallel", "arbitrary"),
            vmem_limit_bytes=_VMEM_LIMIT,
        ),
    )(a, b, bias)


def _block_sparse_matmul(a, b, nnz, blk, *, tm, tn, tk, out_dtype):
    """y = a @ b where only the nonzero (tm, tk) blocks of `a` are visited."""
    m, k = a.shape
    k2, n = b.shape
    assert k == k2 and m % tm == 0 and k % tk == 0 and n % tn == 0, (a.shape, b.shape)
    assert nnz.shape == (m // tm,) and blk.shape == (m // tm, k // tk)

    return pl.pallas_call(
        _bsr_spmm_kernel,
        out_shape=jax.ShapeDtypeStruct((m, n), out_dtype),
        grid_spec=pltpu.PrefetchScalarGridSpec(
            num_scalar_prefetch=2,
            grid=(m // tm, n // tn, k // tk),
            in_specs=[
                pl.BlockSpec(
                    (tm, tk), lambda i, j, kk, nnz_r, blk_r: (i, blk_r[i, kk])
                ),
                pl.BlockSpec(
                    (tk, tn), lambda i, j, kk, nnz_r, blk_r: (blk_r[i, kk], j)
                ),
            ],
            out_specs=pl.BlockSpec(
                (tm, tn), lambda i, j, kk, nnz_r, blk_r: (i, j)
            ),
            scratch_shapes=[pltpu.VMEM((tm, tn), jnp.float32)],
        ),
        compiler_params=pltpu.CompilerParams(
            dimension_semantics=("parallel", "parallel", "arbitrary"),
            vmem_limit_bytes=_VMEM_LIMIT,
        ),
    )(nnz, blk, a, b)


def _build_block_structure(adj_p, tm, tk):
    """Per row-tile: count + ordered list of nonzero column-block indices.

    Padding entries of `blk` repeat the last valid index so consecutive grid
    steps see an unchanged block and their input DMAs are elided.
    """
    mp, kp = adj_p.shape
    nbm, nbk = mp // tm, kp // tk
    nz = jnp.any(adj_p.reshape(nbm, tm, nbk, tk) != 0, axis=(1, 3))  # [nbm, nbk]
    col = jnp.arange(nbk, dtype=jnp.int32)
    order = jnp.argsort(jnp.where(nz, col, col + nbk), axis=1).astype(jnp.int32)
    nnz = jnp.sum(nz, axis=1).astype(jnp.int32)                       # [nbm]
    last = jnp.take_along_axis(order, jnp.maximum(nnz - 1, 0)[:, None], axis=1)
    blk = jnp.where(col[None, :] < nnz[:, None], order, last).astype(jnp.int32)
    return nnz, blk


# ----------------------------- MixHopLayer ------------------------------------


def init_mixhop_params(key, in_channels, out_channels, hops):
    """Deterministic init mirroring nn.Linear shapes: (hops+1) x (W:[out,in], b:[out])."""
    params = []
    bound = 1.0 / jnp.sqrt(jnp.float32(in_channels))
    for _ in range(hops + 1):
        key, kw, kb = jax.random.split(key, 3)
        w = jax.random.uniform(
            kw, (out_channels, in_channels), jnp.float32, -bound, bound
        )
        bvec = jax.random.uniform(kb, (out_channels,), jnp.float32, -bound, bound)
        params.append((w, bvec))
    return params


def prepare_params(params, lane=128):
    """One-time glue: transpose, pad each hop's F_out block to a lane multiple,
    and stack into a single wide GEMM.

    Returns (w_all:[F_in, (hops+1)*fpad], b_all:[1, (hops+1)*fpad], fpad) with
    hop-j occupying lane-aligned columns [j*fpad : (j+1)*fpad].
    """
    out_ch = params[0][0].shape[0]
    fpad = _round_up(out_ch, lane)
    ws, bs = [], []
    for w, b in params:
        ws.append(jnp.pad(w.T, ((0, 0), (0, fpad - out_ch))))
        bs.append(jnp.pad(b, (0, fpad - out_ch)))
    w_all = jnp.concatenate(ws, axis=1)
    b_all = jnp.concatenate(bs)[None, :]
    return w_all, b_all, fpad


@functools.partial(jax.jit, static_argnames=("hops", "out_channels", "fpad"))
def mixhop_forward(x, adj_t, w_all, b_all, *, hops, out_channels, fpad):
    """MixHopLayer forward: fused (hops+1)-wide linear + `hops` batched adj passes."""
    n_nodes, f_in = x.shape
    c_all = (hops + 1) * fpad
    assert w_all.shape[1] == c_all and b_all.shape == (1, c_all)

    bf = jnp.bfloat16

    # ---- static tiling decisions --------------------------------------------
    mp = _round_up(n_nodes, 128)            # rows of x / rows+cols of adj
    t_rows = _pick_tile(mp, 512, 128)       # M and K tile of the adj passes
    # (for v7x megacore, large graphs naturally give >= 2 M blocks at 512)
    kp_lin = _round_up(f_in, 128)
    tk_lin = _pick_tile(kp_lin, 512, 128)
    tn_lin = _pick_tile(c_all, 512, 128)

    # ---- one-time pads / casts (bf16 operands, f32 bias & accumulation) -----
    x_p = x
    if (mp, kp_lin) != (n_nodes, f_in):
        x_p = jnp.pad(x, ((0, mp - n_nodes), (0, kp_lin - f_in)))
    x_p = x_p.astype(bf)

    adj_p = adj_t
    if mp != n_nodes:
        adj_p = jnp.pad(adj_t, ((0, mp - n_nodes), (0, mp - n_nodes)))
    adj_p = adj_p.astype(bf)

    w_p = w_all
    if kp_lin != f_in:
        w_p = jnp.pad(w_all, ((0, kp_lin - f_in), (0, 0)))
    w_p = w_p.astype(bf)
    b_p = b_all.astype(jnp.float32)

    # ---- fused linear for all hops: [mp, (hops+1)*fpad] ----------------------
    y = _dense_matmul_bias(
        x_p, w_p, b_p, tm=t_rows, tn=tn_lin, tk=tk_lin, out_dtype=bf
    )

    # ---- adj block-nonzero structure (computed once, reused every hop) -------
    nnz, blk = _build_block_structure(adj_p, t_rows, t_rows)

    # ---- hop propagation: one batched adj pass per remaining hop -------------
    pieces = [y[:, :fpad]]                  # hop 0: no propagation
    active = y[:, fpad:]                    # hops 1..hops still pending
    for h in range(hops):
        width = (hops - h) * fpad
        tn = _pick_tile(width, 512, 128)
        active = _block_sparse_matmul(
            adj_p, active, nnz, blk, tm=t_rows, tn=tn, tk=t_rows, out_dtype=bf
        )
        pieces.append(active[:, :fpad])     # leading lane-aligned block finished
        active = active[:, fpad:]

    # Single de-pad / concat at the very end (blocks stay lane-aligned above).
    out = jnp.concatenate([p[:n_nodes, :out_channels] for p in pieces], axis=1)
    return out.astype(jnp.float32)


# ----------------------------- reference (plain JAX, f32) ---------------------


def mixhop_reference(x, adj_t, params, hops):
    xs = []
    for j in range(hops + 1):
        w, bvec = params[j]
        x_j = x @ w.T + bvec[None, :]
        for _ in range(j):
            x_j = adj_t @ x_j
        xs.append(x_j)
    return jnp.concatenate(xs, axis=1)


# ----------------------------- main --------------------------------------------

if __name__ == "__main__":
    key = jax.random.PRNGKey(0)

    N = 128            # number of nodes
    IN_CHANNELS = 64
    OUT_CHANNELS = 32
    HOPS = 2

    key, kx, ka = jax.random.split(key, 3)
    x = jax.random.normal(kx, (N, IN_CHANNELS), jnp.float32)

    # Dense stand-in for the sparse adjacency adj_t: random sparse-ish,
    # row-normalized, with self loops (deterministic).
    mask = (jax.random.uniform(ka, (N, N)) < 0.05).astype(jnp.float32)
    adj = mask + jnp.eye(N, dtype=jnp.float32)
    adj_t = adj / jnp.sum(adj, axis=1, keepdims=True)

    params = init_mixhop_params(key, IN_CHANNELS, OUT_CHANNELS, HOPS)
    w_all, b_all, fpad = prepare_params(params)   # one-time transpose/pad/stack

    out = mixhop_forward(
        x, adj_t, w_all, b_all, hops=HOPS, out_channels=OUT_CHANNELS, fpad=fpad
    )
    out = jax.block_until_ready(out)

    ref = mixhop_reference(x, adj_t, params, HOPS)
    assert out.shape == (N, (HOPS + 1) * OUT_CHANNELS), out.shape
    # bf16 operand streaming + bf16 inter-hop activations (f32 accumulation) ->
    # loosened tolerance vs. the pure-f32 reference.
    err = float(jnp.max(jnp.abs(out - ref)))
    assert err < 1e-1, err

    print("KERNEL_OK")
</pallas_src>

<mosaic_0001>
module attributes {stable_mosaic.version = 11 : i64} {
  func.func @_matmul_bias_kernel(%arg0: i32, %arg1: i32, %arg2: i32, %arg3: memref<128x128xbf16, #tpu.memory_space<vmem>>, %arg4: memref<128x384xbf16, #tpu.memory_space<vmem>>, %arg5: memref<1x384xf32, #tpu.memory_space<vmem>>, %arg6: memref<128x384xbf16, #tpu.memory_space<vmem>>, %arg7: memref<128x384xf32, #tpu.memory_space<vmem>>) attributes {dimension_semantics = [#tpu.dimension_semantics<parallel>, #tpu.dimension_semantics<parallel>, #tpu.dimension_semantics<arbitrary>], iteration_bounds = array<i64: 1, 1, 1>, scalar_prefetch = 0 : i64, scratch_operands = 1 : i64, tpu.core_type = #tpu.core_type<tc>, window_params = [{transform_indices = @transform_0, window_bounds = array<i64: 128, 128>}, {transform_indices = @transform_1, window_bounds = array<i64: 128, 384>}, {transform_indices = @transform_2, window_bounds = array<i64: 1, 384>}, {transform_indices = @transform_3, window_bounds = array<i64: 128, 384>}]} {
    %c0_i32 = arith.constant 0 : i32
    %0 = arith.cmpi eq, %arg2, %c0_i32 : i32
    %1 = arith.extui %0 : i1 to i32
    %c0_i32_0 = arith.constant 0 : i32
    %2 = arith.cmpi ne, %1, %c0_i32_0 : i32
    scf.if %2 {
      %cst_10 = arith.constant 0.000000e+00 : f32
      %12 = vector.broadcast %cst_10 : f32 to vector<128x384xf32>
      %c0_11 = arith.constant 0 : index
      %c0_12 = arith.constant 0 : index
      %13 = vector.load %arg7[%c0_11, %c0_12] : memref<128x384xf32, #tpu.memory_space<vmem>>, vector<128x384xf32>
      tpu.vector_store %arg7[%c0_11, %c0_12], %12 {strides = array<i32>} : memref<128x384xf32, #tpu.memory_space<vmem>>, vector<128x384xf32>,
    } else {
    }
    %c0 = arith.constant 0 : index
    %c0_1 = arith.constant 0 : index
    %3 = vector.load %arg7[%c0, %c0_1] : memref<128x384xf32, #tpu.memory_space<vmem>>, vector<128x384xf32>
    %c0_2 = arith.constant 0 : index
    %c0_3 = arith.constant 0 : index
    %4 = vector.load %arg3[%c0_2, %c0_3] : memref<128x128xbf16, #tpu.memory_space<vmem>>, vector<128x128xbf16>
    %c0_4 = arith.constant 0 : index
    %c0_5 = arith.constant 0 : index
    %5 = vector.load %arg4[%c0_4, %c0_5] : memref<128x384xbf16, #tpu.memory_space<vmem>>, vector<128x384xbf16>
    %cst = arith.constant dense<0.000000e+00> : vector<128x384xf32>
    %6 = tpu.matmul %4, %5, %cst {dimension_numbers = #tpu.dot_dimension_numbers<[1], [0], [0], [1], [0, 0, 1, 1], [], []>} : vector<128x128xbf16>, vector<128x384xbf16>, vector<128x384xf32> -> vector<128x384xf32>
    %7 = arith.addf %3, %6 : vector<128x384xf32>
    %c0_6 = arith.constant 0 : index
    %c0_7 = arith.constant 0 : index
    %8 = vector.load %arg7[%c0_6, %c0_7] : memref<128x384xf32, #tpu.memory_space<vmem>>, vector<128x384xf32>
    tpu.vector_store %arg7[%c0_6, %c0_7], %7 {strides = array<i32>} : memref<128x384xf32, #tpu.memory_space<vmem>>, vector<128x384xf32>,
    %c0_i32_8 = arith.constant 0 : i32
    %9 = arith.cmpi eq, %arg2, %c0_i32_8 : i32
    %10 = arith.extui %9 : i1 to i32
    %c0_i32_9 = arith.constant 0 : i32
    %11 = arith.cmpi ne, %10, %c0_i32_9 : i32
    scf.if %11 {
      %c0_10 = arith.constant 0 : index
      %c0_11 = arith.constant 0 : index
      %12 = vector.load %arg7[%c0_10, %c0_11] : memref<128x384xf32, #tpu.memory_space<vmem>>, vector<128x384xf32>
      %c0_12 = arith.constant 0 : index
      %c0_13 = arith.constant 0 : index
      %13 = vector.load %arg5[%c0_12, %c0_13] : memref<1x384xf32, #tpu.memory_space<vmem>>, vector<1x384xf32>
      %14 = vector.broadcast %13 : vector<1x384xf32> to vector<128x384xf32>
      %15 = arith.addf %12, %14 : vector<128x384xf32>
      %16 = arith.truncf %15 : vector<128x384xf32> to vector<128x384xbf16>
      %c0_14 = arith.constant 0 : index
      %c0_15 = arith.constant 0 : index
      %17 = vector.load %arg6[%c0_14, %c0_15] : memref<128x384xbf16, #tpu.memory_space<vmem>>, vector<128x384xbf16>
      tpu.vector_store %arg6[%c0_14, %c0_15], %16 {strides = array<i32>} : memref<128x384xbf16, #tpu.memory_space<vmem>>, vector<128x384xbf16>,
    } else {
    }
    return
  }
  func.func @transform_0(%arg0: i32, %arg1: i32, %arg2: i32) -> (i32, i32) {
    %c0_i32 = arith.constant 0 : i32
    return %arg0, %arg2 : i32, i32
  }
  func.func @transform_1(%arg0: i32, %arg1: i32, %arg2: i32) -> (i32, i32) {
    %c0_i32 = arith.constant 0 : i32
    return %arg2, %arg1 : i32, i32
  }
  func.func @transform_2(%arg0: i32, %arg1: i32, %arg2: i32) -> (i32, i32) {
    %c0_i32 = arith.constant 0 : i32
    %c0_i32_0 = arith.constant 0 : i32
    return %c0_i32, %arg1 : i32, i32
  }
  func.func @transform_3(%arg0: i32, %arg1: i32, %arg2: i32) -> (i32, i32) {
    %c0_i32 = arith.constant 0 : i32
    return %arg0, %arg1 : i32, i32
  }
}

module attributes {stable_mosaic.version = 11 : i64} {
  func.func @_bsr_spmm_kernel(%arg0: i32, %arg1: i32, %arg2: i32, %arg3: memref<1xi32, #tpu.memory_space<smem>>, %arg4: memref<1x1xi32, #tpu.memory_space<smem>>, %arg5: memref<128x128xbf16, #tpu.memory_space<vmem>>, %arg6: memref<128x128xbf16, #tpu.memory_space<vmem>>, %arg7: memref<128x128xbf16, #tpu.memory_space<vmem>>, %arg8: memref<128x128xf32, #tpu.memory_space<vmem>>) attributes {dimension_semantics = [#tpu.dimension_semantics<parallel>, #tpu.dimension_semantics<parallel>, #tpu.dimension_semantics<arbitrary>], iteration_bounds = array<i64: 1, 1, 1>, scalar_prefetch = 2 : i64, scratch_operands = 1 : i64, tpu.core_type = #tpu.core_type<tc>, window_params = [{transform_indices = @transform_0, window_bounds = array<i64: 128, 128>}, {transform_indices = @transform_1, window_bounds = array<i64: 128, 128>}, {transform_indices = @transform_2, window_bounds = array<i64: 128, 128>}]} {
    %c0_i32 = arith.constant 0 : i32
    %0 = arith.cmpi eq, %arg2, %c0_i32 : i32
    %1 = arith.extui %0 : i1 to i32
    %c0_i32_0 = arith.constant 0 : i32
    %2 = arith.cmpi ne, %1, %c0_i32_0 : i32
    scf.if %2 {
      %cst = arith.constant 0.000000e+00 : f32
      %11 = vector.broadcast %cst : f32 to vector<128x128xf32>
      %c0 = arith.constant 0 : index
      %c0_4 = arith.constant 0 : index
      %12 = vector.load %arg8[%c0, %c0_4] : memref<128x128xf32, #tpu.memory_space<vmem>>, vector<128x128xf32>
      tpu.vector_store %arg8[%c0, %c0_4], %11 {strides = array<i32>} : memref<128x128xf32, #tpu.memory_space<vmem>>, vector<128x128xf32>,
    } else {
    }
    %3 = arith.index_cast %arg0 : i32 to index
    %4 = memref.load %arg3[%3] : memref<1xi32, #tpu.memory_space<smem>>
    %5 = arith.cmpi slt, %arg2, %4 : i32
    %6 = arith.extui %5 : i1 to i32
    %c0_i32_1 = arith.constant 0 : i32
    %7 = arith.cmpi ne, %6, %c0_i32_1 : i32
    scf.if %7 {
      %c0 = arith.constant 0 : index
      %c0_4 = arith.constant 0 : index
      %11 = vector.load %arg8[%c0, %c0_4] : memref<128x128xf32, #tpu.memory_space<vmem>>, vector<128x128xf32>
      %c0_5 = arith.constant 0 : index
      %c0_6 = arith.constant 0 : index
      %12 = vector.load %arg5[%c0_5, %c0_6] : memref<128x128xbf16, #tpu.memory_space<vmem>>, vector<128x128xbf16>
      %c0_7 = arith.constant 0 : index
      %c0_8 = arith.constant 0 : index
      %13 = vector.load %arg6[%c0_7, %c0_8] : memref<128x128xbf16, #tpu.memory_space<vmem>>, vector<128x128xbf16>
      %cst = arith.constant dense<0.000000e+00> : vector<128x128xf32>
      %14 = tpu.matmul %12, %13, %cst {dimension_numbers = #tpu.dot_dimension_numbers<[1], [0], [0], [1], [0, 0, 1, 1], [], []>} : vector<128x128xbf16>, vector<128x128xbf16>, vector<128x128xf32> -> vector<128x128xf32>
      %15 = arith.addf %11, %14 : vector<128x128xf32>
      %c0_9 = arith.constant 0 : index
      %c0_10 = arith.constant 0 : index
      %16 = vector.load %arg8[%c0_9, %c0_10] : memref<128x128xf32, #tpu.memory_space<vmem>>, vector<128x128xf32>
      tpu.vector_store %arg8[%c0_9, %c0_10], %15 {strides = array<i32>} : memref<128x128xf32, #tpu.memory_space<vmem>>, vector<128x128xf32>,
    } else {
    }
    %c0_i32_2 = arith.constant 0 : i32
    %8 = arith.cmpi eq, %arg2, %c0_i32_2 : i32
    %9 = arith.extui %8 : i1 to i32
    %c0_i32_3 = arith.constant 0 : i32
    %10 = arith.cmpi ne, %9, %c0_i32_3 : i32
    scf.if %10 {
      %c0 = arith.constant 0 : index
      %c0_4 = arith.constant 0 : index
      %11 = vector.load %arg8[%c0, %c0_4] : memref<128x128xf32, #tpu.memory_space<vmem>>, vector<128x128xf32>
      %12 = arith.truncf %11 : vector<128x128xf32> to vector<128x128xbf16>
      %c0_5 = arith.constant 0 : index
      %c0_6 = arith.constant 0 : index
      %13 = vector.load %arg7[%c0_5, %c0_6] : memref<128x128xbf16, #tpu.memory_space<vmem>>, vector<128x128xbf16>
      tpu.vector_store %arg7[%c0_5, %c0_6], %12 {strides = array<i32>} : memref<128x128xbf16, #tpu.memory_space<vmem>>, vector<128x128xbf16>,
    } else {
    }
    return
  }
  func.func @transform_0(%arg0: i32, %arg1: i32, %arg2: i32, %arg3: memref<1xi32, #tpu.memory_space<smem>>, %arg4: memref<1x1xi32, #tpu.memory_space<smem>>) -> (i32, i32) {
    %0 = arith.index_cast %arg0 : i32 to index
    %1 = arith.index_cast %arg2 : i32 to index
    %2 = memref.load %arg4[%0, %1] : memref<1x1xi32, #tpu.memory_space<smem>>
    %c0_i32 = arith.constant 0 : i32
    return %arg0, %2 : i32, i32
  }
  func.func @transform_1(%arg0: i32, %arg1: i32, %arg2: i32, %arg3: memref<1xi32, #tpu.memory_space<smem>>, %arg4: memref<1x1xi32, #tpu.memory_space<smem>>) -> (i32, i32) {
    %0 = arith.index_cast %arg0 : i32 to index
    %1 = arith.index_cast %arg2 : i32 to index
    %2 = memref.load %arg4[%0, %1] : memref<1x1xi32, #tpu.memory_space<smem>>
    %c0_i32 = arith.constant 0 : i32
    return %2, %arg1 : i32, i32
  }
  func.func @transform_2(%arg0: i32, %arg1: i32, %arg2: i32, %arg3: memref<1xi32, #tpu.memory_space<smem>>, %arg4: memref<1x1xi32, #tpu.memory_space<smem>>) -> (i32, i32) {
    %c0_i32 = arith.constant 0 : i32
    return %arg0, %arg1 : i32, i32
  }
}

module attributes {stable_mosaic.version = 11 : i64} {
  func.func @_bsr_spmm_kernel(%arg0: i32, %arg1: i32, %arg2: i32, %arg3: memref<1xi32, #tpu.memory_space<smem>>, %arg4: memref<1x1xi32, #tpu.memory_space<smem>>, %arg5: memref<128x128xbf16, #tpu.memory_space<vmem>>, %arg6: memref<128x256xbf16, #tpu.memory_space<vmem>>, %arg7: memref<128x256xbf16, #tpu.memory_space<vmem>>, %arg8: memref<128x256xf32, #tpu.memory_space<vmem>>) attributes {dimension_semantics = [#tpu.dimension_semantics<parallel>, #tpu.dimension_semantics<parallel>, #tpu.dimension_semantics<arbitrary>], iteration_bounds = array<i64: 1, 1, 1>, scalar_prefetch = 2 : i64, scratch_operands = 1 : i64, tpu.core_type = #tpu.core_type<tc>, window_params = [{transform_indices = @transform_0, window_bounds = array<i64: 128, 128>}, {transform_indices = @transform_1, window_bounds = array<i64: 128, 256>}, {transform_indices = @transform_2, window_bounds = array<i64: 128, 256>}]} {
    %c0_i32 = arith.constant 0 : i32
    %0 = arith.cmpi eq, %arg2, %c0_i32 : i32
    %1 = arith.extui %0 : i1 to i32
    %c0_i32_0 = arith.constant 0 : i32
    %2 = arith.cmpi ne, %1, %c0_i32_0 : i32
    scf.if %2 {
      %cst = arith.constant 0.000000e+00 : f32
      %11 = vector.broadcast %cst : f32 to vector<128x256xf32>
      %c0 = arith.constant 0 : index
      %c0_4 = arith.constant 0 : index
      %12 = vector.load %arg8[%c0, %c0_4] : memref<128x256xf32, #tpu.memory_space<vmem>>, vector<128x256xf32>
      tpu.vector_store %arg8[%c0, %c0_4], %11 {strides = array<i32>} : memref<128x256xf32, #tpu.memory_space<vmem>>, vector<128x256xf32>,
    } else {
    }
    %3 = arith.index_cast %arg0 : i32 to index
    %4 = memref.load %arg3[%3] : memref<1xi32, #tpu.memory_space<smem>>
    %5 = arith.cmpi slt, %arg2, %4 : i32
    %6 = arith.extui %5 : i1 to i32
    %c0_i32_1 = arith.constant 0 : i32
    %7 = arith.cmpi ne, %6, %c0_i32_1 : i32
    scf.if %7 {
      %c0 = arith.constant 0 : index
      %c0_4 = arith.constant 0 : index
      %11 = vector.load %arg8[%c0, %c0_4] : memref<128x256xf32, #tpu.memory_space<vmem>>, vector<128x256xf32>
      %c0_5 = arith.constant 0 : index
      %c0_6 = arith.constant 0 : index
      %12 = vector.load %arg5[%c0_5, %c0_6] : memref<128x128xbf16, #tpu.memory_space<vmem>>, vector<128x128xbf16>
      %c0_7 = arith.constant 0 : index
      %c0_8 = arith.constant 0 : index
      %13 = vector.load %arg6[%c0_7, %c0_8] : memref<128x256xbf16, #tpu.memory_space<vmem>>, vector<128x256xbf16>
      %cst = arith.constant dense<0.000000e+00> : vector<128x256xf32>
      %14 = tpu.matmul %12, %13, %cst {dimension_numbers = #tpu.dot_dimension_numbers<[1], [0], [0], [1], [0, 0, 1, 1], [], []>} : vector<128x128xbf16>, vector<128x256xbf16>, vector<128x256xf32> -> vector<128x256xf32>
      %15 = arith.addf %11, %14 : vector<128x256xf32>
      %c0_9 = arith.constant 0 : index
      %c0_10 = arith.constant 0 : index
      %16 = vector.load %arg8[%c0_9, %c0_10] : memref<128x256xf32, #tpu.memory_space<vmem>>, vector<128x256xf32>
      tpu.vector_store %arg8[%c0_9, %c0_10], %15 {strides = array<i32>} : memref<128x256xf32, #tpu.memory_space<vmem>>, vector<128x256xf32>,
    } else {
    }
    %c0_i32_2 = arith.constant 0 : i32
    %8 = arith.cmpi eq, %arg2, %c0_i32_2 : i32
    %9 = arith.extui %8 : i1 to i32
    %c0_i32_3 = arith.constant 0 : i32
    %10 = arith.cmpi ne, %9, %c0_i32_3 : i32
    scf.if %10 {
      %c0 = arith.constant 0 : index
      %c0_4 = arith.constant 0 : index
      %11 = vector.load %arg8[%c0, %c0_4] : memref<128x256xf32, #tpu.memory_space<vmem>>, vector<128x256xf32>
      %12 = arith.truncf %11 : vector<128x256xf32> to vector<128x256xbf16>
      %c0_5 = arith.constant 0 : index
      %c0_6 = arith.constant 0 : index
      %13 = vector.load %arg7[%c0_5, %c0_6] : memref<128x256xbf16, #tpu.memory_space<vmem>>, vector<128x256xbf16>
      tpu.vector_store %arg7[%c0_5, %c0_6], %12 {strides = array<i32>} : memref<128x256xbf16, #tpu.memory_space<vmem>>, vector<128x256xbf16>,
    } else {
    }
    return
  }
  func.func @transform_0(%arg0: i32, %arg1: i32, %arg2: i32, %arg3: memref<1xi32, #tpu.memory_space<smem>>, %arg4: memref<1x1xi32, #tpu.memory_space<smem>>) -> (i32, i32) {
    %0 = arith.index_cast %arg0 : i32 to index
    %1 = arith.index_cast %arg2 : i32 to index
    %2 = memref.load %arg4[%0, %1] : memref<1x1xi32, #tpu.memory_space<smem>>
    %c0_i32 = arith.constant 0 : i32
    return %arg0, %2 : i32, i32
  }
  func.func @transform_1(%arg0: i32, %arg1: i32, %arg2: i32, %arg3: memref<1xi32, #tpu.memory_space<smem>>, %arg4: memref<1x1xi32, #tpu.memory_space<smem>>) -> (i32, i32) {
    %0 = arith.index_cast %arg0 : i32 to index
    %1 = arith.index_cast %arg2 : i32 to index
    %2 = memref.load %arg4[%0, %1] : memref<1x1xi32, #tpu.memory_space<smem>>
    %c0_i32 = arith.constant 0 : i32
    return %2, %arg1 : i32, i32
  }
  func.func @transform_2(%arg0: i32, %arg1: i32, %arg2: i32, %arg3: memref<1xi32, #tpu.memory_space<smem>>, %arg4: memref<1x1xi32, #tpu.memory_space<smem>>) -> (i32, i32) {
    %c0_i32 = arith.constant 0 : i32
    return %arg0, %arg1 : i32, i32
  }
}

</mosaic_0001>

<bundles_post_ra>
// kernel: mixhop_forward.5
= control target key start
LH: loop header
LB: loop body
LE: loop exit
PB: predicated region body
PF: predicated region fallthrough
CT: control target
= control target key end

     0   :  { %v558_v0 = vmov 0.0   ;;  %s646_s0 = inlined_call_operand.<no memory space> [shape: s32[1], index: 0, kind: input, shape index: {}]   ;;  %s647_s1 = inlined_call_operand.<no memory space> [shape: s32[1,1], index: 1, kind: input, shape index: {}]   ;;  %s648_s4 = inlined_call_operand.vmem [shape: bf16[128,128], index: 4, kind: output, shape index: {}]   ;;  %s649_s2 = inlined_call_operand.vmem [shape: bf16[128,128], index: 2, kind: input, shape index: {}]   ;;  %s650_s3 = inlined_call_operand.vmem [shape: bf16[128,128], index: 3, kind: input, shape index: {}]  }
   0x1   :  { %p62_p0 = scmp.lt.s32.totalorder %s647_s1, 0  ;;  %s402_s19 = sshll.u32 %s647_s1, 4  ;;  %88 = vst [vmem:[#allocation2 + $0x30] sm:$0xff] %v558_v0 }
   0x2   :  { %p75_p1 = scmp.lt.s32.totalorder %s402_s19, 15  ;;  %89 = vst [vmem:[#allocation2] sm:$0xff] %v558_v0  ;;  %p405_p2 = scmp.le.s32.totalorder %s646_s0, 0 }
   0x3   :  { %s652_s1 = smov (!%p62_p0, %s647_s1), 0  ;;  %90 = vst [vmem:[#allocation2 + $0x58] sm:$0xff] %v558_v0 }
   0x4   :  { %s654_s19 = smov (!%p75_p1, %s402_s19), 15  ;;  %91 = vst [vmem:[#allocation2 + $0x18] sm:$0xff] %v558_v0  ;;  %s401_s22 = sshll.u32 %s652_s1, 2 }
   0x5   :  { %92 = vst [vmem:[#allocation2 + $0x50] sm:$0xff] %v558_v0  ;;  %s596_s25 = scalar_lea.vmem %s649_s2, %s401_s22  ;;  %s403_s26 = sshll.u32 %s654_s19, 2 }
   0x6   :  { %93 = vst [vmem:[#allocation2 + $0x68] sm:$0xff] %v558_v0  ;;  %s601_s29 = scalar_lea.vmem %s650_s3, %s403_s26 }
   0x7   :  { %94 = vst [vmem:[#allocation2 + $0x8] sm:$0xff] %v558_v0 }
   0x8   :  { %95 = vst [vmem:[#allocation2 + $0x48] sm:$0xff] %v558_v0 }
   0x9   :  { %96 = vst [vmem:[#allocation2 + $0x40] sm:$0xff] %v558_v0 }
   0xa   :  { %97 = vst [vmem:[#allocation2 + $0x20] sm:$0xff] %v558_v0 }
   0xb   :  { %98 = vst [vmem:[#allocation2 + $0x10] sm:$0xff] %v558_v0 }
   0xc   :  { %99 = vst [vmem:[#allocation2 + $0x38] sm:$0xff] %v558_v0  ;;  %108 = sbr.rel (%p405_p2) target bundleno = 210 (0xd2), region = 17 }
   0xd   :  { %100 = vst [vmem:[#allocation2 + $0x60] sm:$0xff] %v558_v0 }
   0xe   :  { %101 = vst [vmem:[#allocation2 + $0x70] sm:$0xff] %v558_v0 }
   0xf   :  { %102 = vst [vmem:[#allocation2 + $0x78] sm:$0xff] %v558_v0 }
  0x10   :  { %103 = vst [vmem:[#allocation2 + $0x28] sm:$0xff] %v558_v0 }
  0x11   :  { %v485_v1 = vld [vmem:[%s601_s29 + $0x38] sm:$0xff]  ;;  %v484_v2 = vld [vmem:[%s601_s29 + $0x30] sm:$0xff]  ;;  %v483_v3 = vld [vmem:[%s601_s29 + $0x28] sm:$0xff] }
  0x12   :  { %253 = vmatpush.bf16.msra.mxu0 %v485_v1  ;;  %533 = vmatpush.bf16.msra.mxu1 %v485_v1  ;;  %v482_v4 = vld [vmem:[%s601_s29 + $0x20] sm:$0xff]  ;;  %v481_v5 = vld [vmem:[%s601_s29 + $0x18] sm:$0xff]  ;;  %v480_v6 = vld [vmem:[%s601_s29 + $0x10] sm:$0xff] }
  0x13   :  { %534 = vmatpush.bf16.msra.mxu2 %v485_v1  ;;  %535 = vmatpush.bf16.msra.mxu3 %v485_v1  ;;  %v479_v7 = vld [vmem:[%s601_s29 + $0x8] sm:$0xff]  ;;  %v478_v8 = vld [vmem:[%s601_s29] sm:$0xff]  ;;  %v472_v10 = vld [vmem:[%s596_s25 + $0x10] sm:$0xff] }
  0x14   :  { %v470_v9 = vld [vmem:[%s596_s25] sm:$0xff]  ;;  %v476_v12 = vld [vmem:[%s596_s25 + $0x30] sm:$0xff]  ;;  %v471_v13 = vld [vmem:[%s596_s25 + $0x8] sm:$0xff] }
  0x15   :  { %v474_v11 = vld [vmem:[%s596_s25 + $0x20] sm:$0xff]  ;;  %v473_v14 = vld [vmem:[%s596_s25 + $0x18] sm:$0xff]  ;;  %v475_v15 = vld [vmem:[%s596_s25 + $0x28] sm:$0xff] }
  0x16   :  { %254 = vmatpush.bf16.msra.mxu0 %v484_v2  ;;  %536 = vmatpush.bf16.msra.mxu1 %v484_v2  ;;  %v477_v16 = vld [vmem:[%s596_s25 + $0x38] sm:$0xff]  ;;  %v109_v17 = vld [vmem:[#allocation2 + $0x30] sm:$0xff]  ;;  %v117_v23 = vld [vmem:[#allocation2 + $0x40] sm:$0xff] }
  0x17   :  { %537 = vmatpush.bf16.msra.mxu2 %v484_v2  ;;  %538 = vmatpush.bf16.msra.mxu3 %v484_v2  ;;  %v113_v18 = vld [vmem:[#allocation2 + $0x50] sm:$0xff]  ;;  %v121_v24 = vld [vmem:[#allocation2 + $0x60] sm:$0xff]  ;;  %v114_v26 = vld [vmem:[#allocation2 + $0x68] sm:$0xff] }
  0x18   :  { %v110_v25 = vld [vmem:[#allocation2] sm:$0xff]  ;;  %v122_v36 = vld [vmem:[#allocation2 + $0x70] sm:$0xff]  ;;  %v111_v37 = vld [vmem:[#allocation2 + $0x58] sm:$0xff] }
  0x19   :  { %v118_v35 = vld [vmem:[#allocation2 + $0x20] sm:$0xff]  ;;  %v115_v38 = vld [vmem:[#allocation2 + $0x8] sm:$0xff]  ;;  %v119_v47 = vld [vmem:[#allocation2 + $0x10] sm:$0xff] }
  0x1a   :  { %255 = vmatpush.bf16.msra.mxu0 %v483_v3  ;;  %539 = vmatpush.bf16.msra.mxu1 %v483_v3  ;;  %v123_v48 = vld [vmem:[#allocation2 + $0x78] sm:$0xff]  ;;  %v116_v50 = vld [vmem:[#allocation2 + $0x48] sm:$0xff] }
  0x1b   :  { %540 = vmatpush.bf16.msra.mxu2 %v483_v3  ;;  %541 = vmatpush.bf16.msra.mxu3 %v483_v3  ;;  %v112_v49 = vld [vmem:[#allocation2 + $0x18] sm:$0xff]  ;;  %v124_v60 = vld [vmem:[#allocation2 + $0x28] sm:$0xff] }
  0x1c   :  { %v120_v59 = vld [vmem:[#allocation2 + $0x38] sm:$0xff] }
  0x1e   :  { %256 = vmatpush.bf16.msra.mxu0 %v482_v4  ;;  %542 = vmatpush.bf16.msra.mxu1 %v482_v4 }
  0x1f   :  { %543 = vmatpush.bf16.msra.mxu2 %v482_v4  ;;  %544 = vmatpush.bf16.msra.mxu3 %v482_v4 }
  0x22   :  { %257 = vmatpush.bf16.msra.mxu0 %v481_v5  ;;  %545 = vmatpush.bf16.msra.mxu1 %v481_v5 }
  0x23   :  { %546 = vmatpush.bf16.msra.mxu2 %v481_v5  ;;  %547 = vmatpush.bf16.msra.mxu3 %v481_v5 }
  0x26   :  { %258 = vmatpush.bf16.msra.mxu0 %v480_v6  ;;  %548 = vmatpush.bf16.msra.mxu1 %v480_v6 }
  0x27   :  { %549 = vmatpush.bf16.msra.mxu2 %v480_v6  ;;  %550 = vmatpush.bf16.msra.mxu3 %v480_v6 }
  0x2a   :  { %259 = vmatpush.bf16.msra.mxu0 %v479_v7  ;;  %551 = vmatpush.bf16.msra.mxu1 %v479_v7 }
  0x2b   :  { %552 = vmatpush.bf16.msra.mxu2 %v479_v7  ;;  %553 = vmatpush.bf16.msra.mxu3 %v479_v7 }
  0x2e   :  { %260 = vmatpush.bf16.msra.mxu0 %v478_v8  ;;  %554 = vmatpush.bf16.msra.mxu1 %v478_v8 }
  0x2f   :  { %555 = vmatpush.bf16.msra.mxu2 %v478_v8  ;;  %556 = vmatpush.bf16.msra.mxu3 %v478_v8 }
  0x31   :  { %261 = vmatmul.bf16.vlgmr.msra.gmra.mxu0 %v470_v9  ;;  %271 = vmatmul.bf16.vlgmr.msra.gmra.mxu1 %v472_v10 }
  0x32   :  { %281 = vmatmul.bf16.vlgmr.msra.gmra.mxu2 %v474_v11  ;;  %291 = vmatmul.bf16.vlgmr.msra.gmra.mxu3 %v476_v12 }
  0x41   :  { %266 = vmatmul.bf16.gmra.mxu0 %v471_v13  ;;  %276 = vmatmul.bf16.gmra.mxu1 %v473_v14 }
  0x42   :  { %286 = vmatmul.bf16.gmra.mxu2 %v475_v15  ;;  %296 = vmatmul.bf16.gmra.mxu3 %v477_v16 }
  0xae   :  { %v262_v19 = vpop.f32.mrf.mxu0  ;;  %v272_v20 = vpop.f32.mrf.mxu1 }
  0xaf   :  { %v302_v21 = vadd.f32 %v262_v19, %v109_v17  ;;  %v306_v22 = vadd.f32 %v272_v20, %v113_v18 }
  0xb1   :  { %318 = vst [vmem:[#allocation2 + $0x30] sm:$0xff] %v302_v21 }
  0xb2   :  { %322 = vst [vmem:[#allocation2 + $0x50] sm:$0xff] %v306_v22 }
  0xb5   :  { %v282_v27 = vpop.f32.mrf.mxu2  ;;  %v292_v28 = vpop.f32.mrf.mxu3 }
  0xb6   :  { %v310_v29 = vadd.f32 %v282_v27, %v117_v23  ;;  %v314_v30 = vadd.f32 %v292_v28, %v121_v24  ;;  %v264_v31 = vpop.f32.mrf.mxu0  ;;  %v274_v32 = vpop.f32.mrf.mxu1 }
  0xb7   :  { %v303_v33 = vadd.f32 %v264_v31, %v110_v25  ;;  %v307_v34 = vadd.f32 %v274_v32, %v114_v26 }
  0xb8   :  { %326 = vst [vmem:[#allocation2 + $0x40] sm:$0xff] %v310_v29 }
  0xb9   :  { %330 = vst [vmem:[#allocation2 + $0x60] sm:$0xff] %v314_v30 }
  0xba   :  { %319 = vst [vmem:[#allocation2] sm:$0xff] %v303_v33 }
  0xbb   :  { %323 = vst [vmem:[#allocation2 + $0x68] sm:$0xff] %v307_v34 }
  0xbd   :  { %v284_v39 = vpop.f32.mrf.mxu2  ;;  %v294_v40 = vpop.f32.mrf.mxu3 }
  0xbe   :  { %v311_v41 = vadd.f32 %v284_v39, %v118_v35  ;;  %v315_v42 = vadd.f32 %v294_v40, %v122_v36  ;;  %v267_v43 = vpop.f32.mrf.mxu0  ;;  %v277_v44 = vpop.f32.mrf.mxu1 }
  0xbf   :  { %v304_v45 = vadd.f32 %v267_v43, %v111_v37  ;;  %v308_v46 = vadd.f32 %v277_v44, %v115_v38 }
  0xc0   :  { %327 = vst [vmem:[#allocation2 + $0x20] sm:$0xff] %v311_v41 }
  0xc1   :  { %331 = vst [vmem:[#allocation2 + $0x70] sm:$0xff] %v315_v42 }
  0xc2   :  { %320 = vst [vmem:[#allocation2 + $0x58] sm:$0xff] %v304_v45 }
  0xc3   :  { %324 = vst [vmem:[#allocation2 + $0x8] sm:$0xff] %v308_v46 }
  0xc5   :  { %v287_v51 = vpop.f32.mrf.mxu2  ;;  %v297_v52 = vpop.f32.mrf.mxu3 }
  0xc6   :  { %v312_v53 = vadd.f32 %v287_v51, %v119_v47  ;;  %v316_v54 = vadd.f32 %v297_v52, %v123_v48  ;;  %v269_v55 = vpop.f32.mrf.mxu0  ;;  %v279_v56 = vpop.f32.mrf.mxu1 }
  0xc7   :  { %v305_v57 = vadd.f32 %v269_v55, %v112_v49  ;;  %v309_v58 = vadd.f32 %v279_v56, %v116_v50 }
  0xc8   :  { %328 = vst [vmem:[#allocation2 + $0x10] sm:$0xff] %v312_v53 }
  0xc9   :  { %332 = vst [vmem:[#allocation2 + $0x78] sm:$0xff] %v316_v54 }
  0xca   :  { %321 = vst [vmem:[#allocation2 + $0x18] sm:$0xff] %v305_v57 }
  0xcb   :  { %325 = vst [vmem:[#allocation2 + $0x48] sm:$0xff] %v309_v58 }
  0xcd   :  { %v289_v61 = vpop.f32.mrf.mxu2  ;;  %v299_v62 = vpop.f32.mrf.mxu3 }
  0xce   :  { %v313_v63 = vadd.f32 %v289_v61, %v120_v59  ;;  %v317_v0 = vadd.f32 %v299_v62, %v124_v60 }
  0xd0   :  { %329 = vst [vmem:[#allocation2 + $0x38] sm:$0xff] %v313_v63 }
  0xd1   :  { %333 = vst [vmem:[#allocation2 + $0x28] sm:$0xff] %v317_v0 }
  0xd2 PF:  { %v337_v1 = vld [vmem:[#allocation2 + $0x30] sm:$0xff]  ;;  %v338_v2 = vld [vmem:[#allocation2] sm:$0xff]  ;;  %v339_v3 = vld [vmem:[#allocation2 + $0x58] sm:$0xff] }
  0xd3   :  { %v489_v4 = vpack.c.bf16 %v338_v2, %v337_v1  ;;  %v340_v5 = vld [vmem:[#allocation2 + $0x18] sm:$0xff]  ;;  %v341_v6 = vld [vmem:[#allocation2 + $0x50] sm:$0xff]  ;;  %v342_v7 = vld [vmem:[#allocation2 + $0x68] sm:$0xff] }
  0xd4   :  { %v494_v8 = vpack.c.bf16 %v340_v5, %v339_v3  ;;  %v499_v9 = vpack.c.bf16 %v342_v7, %v341_v6  ;;  %v343_v10 = vld [vmem:[#allocation2 + $0x8] sm:$0xff]  ;;  %v345_v12 = vld [vmem:[#allocation2 + $0x40] sm:$0xff]  ;;  %v347_v15 = vld [vmem:[#allocation2 + $0x10] sm:$0xff] }
  0xd5   :  { %v344_v11 = vld [vmem:[#allocation2 + $0x48] sm:$0xff]  ;;  %490 = vst [vmem:[%s648_s4] sm:$0xff] %v489_v4   ;;  %v346_v14 = vld [vmem:[#allocation2 + $0x20] sm:$0xff] }
  0xd6   :  { %v504_v13 = vpack.c.bf16 %v344_v11, %v343_v10  ;;  %526 = vst [vmem:[%s648_s4 + $0x8] sm:$0xff] %v494_v8   ;;  %v509_v17 = vpack.c.bf16 %v346_v14, %v345_v12  ;;  %v349_v19 = vld [vmem:[#allocation2 + $0x60] sm:$0xff]  ;;  %v350_v20 = vld [vmem:[#allocation2 + $0x70] sm:$0xff] }
  0xd7   :  { %v348_v16 = vld [vmem:[#allocation2 + $0x38] sm:$0xff]  ;;  %527 = vst [vmem:[%s648_s4 + $0x10] sm:$0xff] %v499_v9   ;;  %v519_v22 = vpack.c.bf16 %v350_v20, %v349_v19 }
  0xd8   :  { %v514_v18 = vpack.c.bf16 %v348_v16, %v347_v15  ;;  %v351_v21 = vld [vmem:[#allocation2 + $0x78] sm:$0xff]  ;;  %v352_v23 = vld [vmem:[#allocation2 + $0x28] sm:$0xff]  ;;  %528 = vst [vmem:[%s648_s4 + $0x18] sm:$0xff] %v504_v13  }
  0xd9   :  { %v524_v24 = vpack.c.bf16 %v352_v23, %v351_v21  ;;  %529 = vst [vmem:[%s648_s4 + $0x20] sm:$0xff] %v509_v17  }
  0xda   :  { %530 = vst [vmem:[%s648_s4 + $0x28] sm:$0xff] %v514_v18  }
  0xdb   :  { %531 = vst [vmem:[%s648_s4 + $0x30] sm:$0xff] %v519_v22  }
  0xdc   :  { %532 = vst [vmem:[%s648_s4 + $0x38] sm:$0xff] %v524_v24  }

// kernel: mixhop_forward.4
= control target key start
LH: loop header
LB: loop body
LE: loop exit
PB: predicated region body
PF: predicated region fallthrough
CT: control target
= control target key end

     0   :  { %v709_v0 = vmov 0.0   ;;  %s845_s0 = inlined_call_operand.<no memory space> [shape: s32[1], index: 0, kind: input, shape index: {}]   ;;  %s846_s1 = inlined_call_operand.<no memory space> [shape: s32[1,1], index: 1, kind: input, shape index: {}]   ;;  %s847_s4 = inlined_call_operand.vmem [shape: bf16[128,256], index: 4, kind: output, shape index: {}]   ;;  %s848_s2 = inlined_call_operand.vmem [shape: bf16[128,128], index: 2, kind: input, shape index: {}]   ;;  %s849_s3 = inlined_call_operand.vmem [shape: bf16[128,256], index: 3, kind: input, shape index: {}]  }
   0x1   :  { %p64_p0 = scmp.lt.s32.totalorder %s846_s1, 0  ;;  %s566_s19 = sshll.u32 %s846_s1, 4  ;;  %91 = vst [vmem:[#allocation2 + $0xb0] sm:$0xff] %v709_v0 }
   0x2   :  { %p77_p1 = scmp.lt.s32.totalorder %s566_s19, 15  ;;  %92 = vst [vmem:[#allocation2] sm:$0xff] %v709_v0  ;;  %p570_p2 = scmp.le.s32.totalorder %s845_s0, 0 }
   0x3   :  { %s851_s1 = smov (!%p64_p0, %s846_s1), 0  ;;  %93 = vst [vmem:[#allocation2 + $0xd8] sm:$0xff] %v709_v0 }
   0x4   :  { %s853_s19 = smov (!%p77_p1, %s566_s19), 15  ;;  %94 = vst [vmem:[#allocation2 + $0x18] sm:$0xff] %v709_v0  ;;  %s565_s22 = sshll.u32 %s851_s1, 2 }
   0x5   :  { %95 = vst [vmem:[#allocation2 + $0x50] sm:$0xff] %v709_v0  ;;  %s747_s25 = scalar_lea.vmem %s848_s2, %s565_s22  ;;  %s667_s26 = sshll.u32 %s853_s19, 3 }
   0x6   :  { %96 = vst [vmem:[#allocation2 + $0x68] sm:$0xff] %v709_v0  ;;  %s752_s29 = scalar_lea.vmem %s849_s3, %s667_s26 }
   0x7   :  { %97 = vst [vmem:[#allocation2 + $0x30] sm:$0xff] %v709_v0 }
   0x8   :  { %98 = vst [vmem:[#allocation2 + $0x48] sm:$0xff] %v709_v0 }
   0x9   :  { %99 = vst [vmem:[#allocation2 + $0x80] sm:$0xff] %v709_v0 }
   0xa   :  { %100 = vst [vmem:[#allocation2 + $0x88] sm:$0xff] %v709_v0 }
   0xb   :  { %101 = vst [vmem:[#allocation2 + $0xe8] sm:$0xff] %v709_v0 }
   0xc   :  { %102 = vst [vmem:[#allocation2 + $0xb8] sm:$0xff] %v709_v0 }
   0xd   :  { %103 = vst [vmem:[#allocation2 + $0x60] sm:$0xff] %v709_v0 }
   0xe   :  { %104 = vst [vmem:[#allocation2 + $0xf0] sm:$0xff] %v709_v0 }
   0xf   :  { %105 = vst [vmem:[#allocation2 + $0x8] sm:$0xff] %v709_v0 }
  0x10   :  { %106 = vst [vmem:[#allocation2 + $0x78] sm:$0xff] %v709_v0 }
  0x11   :  { %107 = vst [vmem:[#allocation2 + $0x38] sm:$0xff] %v709_v0 }
  0x12   :  { %108 = vst [vmem:[#allocation2 + $0x58] sm:$0xff] %v709_v0 }
  0x13   :  { %109 = vst [vmem:[#allocation2 + $0x40] sm:$0xff] %v709_v0 }
  0x14   :  { %110 = vst [vmem:[#allocation2 + $0xc8] sm:$0xff] %v709_v0 }
  0x15   :  { %111 = vst [vmem:[#allocation2 + $0xe0] sm:$0xff] %v709_v0 }
  0x16   :  { %112 = vst [vmem:[#allocation2 + $0x90] sm:$0xff] %v709_v0 }
  0x17   :  { %113 = vst [vmem:[#allocation2 + $0x70] sm:$0xff] %v709_v0 }
  0x18   :  { %114 = vst [vmem:[#allocation2 + $0xc0] sm:$0xff] %v709_v0 }
  0x19   :  { %115 = vst [vmem:[#allocation2 + $0xa8] sm:$0xff] %v709_v0 }
  0x1a   :  { %116 = vst [vmem:[#allocation2 + $0xd0] sm:$0xff] %v709_v0 }
  0x1b   :  { %117 = vst [vmem:[#allocation2 + $0x10] sm:$0xff] %v709_v0 }
  0x1c   :  { %118 = vst [vmem:[#allocation2 + $0x28] sm:$0xff] %v709_v0  ;;  %127 = sbr.rel (%p570_p2) target bundleno = 259 (0x103), region = 17 }
  0x1d   :  { %119 = vst [vmem:[#allocation2 + $0xa0] sm:$0xff] %v709_v0 }
  0x1e   :  { %120 = vst [vmem:[#allocation2 + $0xf8] sm:$0xff] %v709_v0 }
  0x1f   :  { %121 = vst [vmem:[#allocation2 + $0x20] sm:$0xff] %v709_v0 }
  0x20   :  { %122 = vst [vmem:[#allocation2 + $0x98] sm:$0xff] %v709_v0 }
  0x21   :  { %v661_v1 = vld [vmem:[%s752_s29 + $0x70] sm:$0xf]  ;;  %v691_v2 = vld [vmem:[%s752_s29 + $0x74] sm:$0xf0]  ;;  %v690_v3 = vld [vmem:[%s752_s29 + $0x74] sm:$0xf] }
  0x22   :  { %v662_v4 = vor.u32 %v691_v2, %v661_v1  ;;  %v663_v5 = vld [vmem:[%s752_s29 + $0x78] sm:$0xf0]  ;;  %v653_v6 = vld [vmem:[%s752_s29 + $0x60] sm:$0xf]  ;;  %v689_v7 = vld [vmem:[%s752_s29 + $0x64] sm:$0xf0] }
  0x23   :  { %v666_v8 = vor.u32 %v690_v3, %v663_v5  ;;  %v688_v9 = vld [vmem:[%s752_s29 + $0x64] sm:$0xf]  ;;  %v655_v10 = vld [vmem:[%s752_s29 + $0x68] sm:$0xf0]  ;;  %v654_v11 = vor.u32 %v689_v7, %v653_v6  ;;  %v645_v13 = vld [vmem:[%s752_s29 + $0x50] sm:$0xf] }
  0x24   :  { %320 = vmatpush.bf16.msra.mxu0 %v662_v4  ;;  %692 = vmatpush.bf16.msra.mxu2 %v662_v4  ;;  %v658_v12 = vor.u32 %v688_v9, %v655_v10  ;;  %v687_v14 = vld [vmem:[%s752_s29 + $0x54] sm:$0xf0]  ;;  %v686_v15 = vld [vmem:[%s752_s29 + $0x54] sm:$0xf]  ;;  %v647_v16 = vld [vmem:[%s752_s29 + $0x58] sm:$0xf0] }
  0x25   :  { %369 = vmatpush.bf16.msra.mxu1 %v666_v8  ;;  %700 = vmatpush.bf16.msra.mxu3 %v666_v8  ;;  %v646_v17 = vor.u32 %v687_v14, %v645_v13  ;;  %v650_v18 = vor.u32 %v686_v15, %v647_v16  ;;  %v637_v19 = vld [vmem:[%s752_s29 + $0x40] sm:$0xf]  ;;  %v685_v20 = vld [vmem:[%s752_s29 + $0x44] sm:$0xf0]  ;;  %v684_v21 = vld [vmem:[%s752_s29 + $0x44] sm:$0xf] }
  0x26   :  { %v639_v22 = vld [vmem:[%s752_s29 + $0x48] sm:$0xf0]  ;;  %v638_v23 = vor.u32 %v685_v20, %v637_v19  ;;  %v629_v25 = vld [vmem:[%s752_s29 + $0x30] sm:$0xf]  ;;  %v683_v26 = vld [vmem:[%s752_s29 + $0x34] sm:$0xf0] }
  0x27   :  { %v642_v24 = vor.u32 %v684_v21, %v639_v22  ;;  %v682_v27 = vld [vmem:[%s752_s29 + $0x34] sm:$0xf]  ;;  %v631_v28 = vld [vmem:[%s752_s29 + $0x38] sm:$0xf0]  ;;  %v630_v29 = vor.u32 %v683_v26, %v629_v25  ;;  %v621_v31 = vld [vmem:[%s752_s29 + $0x20] sm:$0xf] }
  0x28   :  { %321 = vmatpush.bf16.msra.mxu0 %v654_v11  ;;  %693 = vmatpush.bf16.msra.mxu2 %v654_v11  ;;  %v634_v30 = vor.u32 %v682_v27, %v631_v28  ;;  %v681_v32 = vld [vmem:[%s752_s29 + $0x24] sm:$0xf0]  ;;  %v680_v33 = vld [vmem:[%s752_s29 + $0x24] sm:$0xf]  ;;  %v623_v34 = vld [vmem:[%s752_s29 + $0x28] sm:$0xf0] }
  0x29   :  { %370 = vmatpush.bf16.msra.mxu1 %v658_v12  ;;  %701 = vmatpush.bf16.msra.mxu3 %v658_v12  ;;  %v622_v35 = vor.u32 %v681_v32, %v621_v31  ;;  %v626_v36 = vor.u32 %v680_v33, %v623_v34  ;;  %v613_v37 = vld [vmem:[%s752_s29 + $0x10] sm:$0xf]  ;;  %v679_v38 = vld [vmem:[%s752_s29 + $0x14] sm:$0xf0]  ;;  %v678_v39 = vld [vmem:[%s752_s29 + $0x14] sm:$0xf] }
  0x2a   :  { %v615_v40 = vld [vmem:[%s752_s29 + $0x18] sm:$0xf0]  ;;  %v614_v41 = vor.u32 %v679_v38, %v613_v37  ;;  %v605_v43 = vld [vmem:[%s752_s29] sm:$0xf]  ;;  %v677_v44 = vld [vmem:[%s752_s29 + $0x4] sm:$0xf0] }
  0x2b   :  { %v618_v42 = vor.u32 %v678_v39, %v615_v40  ;;  %v676_v45 = vld [vmem:[%s752_s29 + $0x4] sm:$0xf]  ;;  %v607_v46 = vld [vmem:[%s752_s29 + $0x8] sm:$0xf0]  ;;  %v606_v47 = vor.u32 %v677_v44, %v605_v43  ;;  %v670_v53 = vld [vmem:[%s747_s25 + $0x10] sm:$0xff] }
  0x2c   :  { %322 = vmatpush.bf16.msra.mxu0 %v646_v17  ;;  %694 = vmatpush.bf16.msra.mxu2 %v646_v17  ;;  %v610_v48 = vor.u32 %v676_v45, %v607_v46  ;;  %v668_v49 = vld [vmem:[%s747_s25] sm:$0xff]  ;;  %v669_v51 = vld [vmem:[%s747_s25 + $0x8] sm:$0xff]  ;;  %v674_v54 = vld [vmem:[%s747_s25 + $0x30] sm:$0xff] }
  0x2d   :  { %371 = vmatpush.bf16.msra.mxu1 %v650_v18  ;;  %702 = vmatpush.bf16.msra.mxu3 %v650_v18  ;;  %v672_v50 = vld [vmem:[%s747_s25 + $0x20] sm:$0xff]  ;;  %v673_v52 = vld [vmem:[%s747_s25 + $0x28] sm:$0xff]  ;;  %v671_v55 = vld [vmem:[%s747_s25 + $0x18] sm:$0xff] }
  0x2e   :  { %v675_v56 = vld [vmem:[%s747_s25 + $0x38] sm:$0xff]  ;;  %v128_v57 = vld [vmem:[#allocation2 + $0xb0] sm:$0xff]  ;;  %v129_v58 = vld [vmem:[#allocation2] sm:$0xff] }
  0x2f   :  { %v144_v63 = vld [vmem:[#allocation2 + $0x38] sm:$0xff]  ;;  %v146_v11 = vld [vmem:[#allocation2 + $0x40] sm:$0xff]  ;;  %v147_v12 = vld [vmem:[#allocation2 + $0xc8] sm:$0xff] }
  0x30   :  { %323 = vmatpush.bf16.msra.mxu0 %v638_v23  ;;  %695 = vmatpush.bf16.msra.mxu2 %v638_v23  ;;  %v145_v0 = vld [vmem:[#allocation2 + $0x58] sm:$0xff]  ;;  %v132_v14 = vld [vmem:[#allocation2 + $0x50] sm:$0xff]  ;;  %v133_v17 = vld [vmem:[#allocation2 + $0x68] sm:$0xff] }
  0x31   :  { %372 = vmatpush.bf16.msra.mxu1 %v642_v24  ;;  %703 = vmatpush.bf16.msra.mxu3 %v642_v24  ;;  %v130_v2 = vld [vmem:[#allocation2 + $0xd8] sm:$0xff]  ;;  %v148_v23 = vld [vmem:[#allocation2 + $0xe0] sm:$0xff]  ;;  %v149_v24 = vld [vmem:[#allocation2 + $0x90] sm:$0xff] }
  0x32   :  { %v131_v5 = vld [vmem:[#allocation2 + $0x18] sm:$0xff]  ;;  %v134_v26 = vld [vmem:[#allocation2 + $0x30] sm:$0xff]  ;;  %v136_v38 = vld [vmem:[#allocation2 + $0x80] sm:$0xff] }
  0x34   :  { %324 = vmatpush.bf16.msra.mxu0 %v630_v29  ;;  %696 = vmatpush.bf16.msra.mxu2 %v630_v29  ;;  %v135_v29 = vld [vmem:[#allocation2 + $0x48] sm:$0xff] }
  0x35   :  { %373 = vmatpush.bf16.msra.mxu1 %v634_v30  ;;  %704 = vmatpush.bf16.msra.mxu3 %v634_v30 }
  0x38   :  { %325 = vmatpush.bf16.msra.mxu0 %v622_v35  ;;  %697 = vmatpush.bf16.msra.mxu2 %v622_v35  ;;  %v150_v35 = vld [vmem:[#allocation2 + $0x70] sm:$0xff] }
  0x39   :  { %374 = vmatpush.bf16.msra.mxu1 %v626_v36  ;;  %705 = vmatpush.bf16.msra.mxu3 %v626_v36  ;;  %v151_v36 = vld [vmem:[#allocation2 + $0xc0] sm:$0xff] }
  0x3c   :  { %326 = vmatpush.bf16.msra.mxu0 %v614_v41  ;;  %698 = vmatpush.bf16.msra.mxu2 %v614_v41  ;;  %v137_v41 = vld [vmem:[#allocation2 + $0x88] sm:$0xff] }
  0x3d   :  { %375 = vmatpush.bf16.msra.mxu1 %v618_v42  ;;  %706 = vmatpush.bf16.msra.mxu3 %v618_v42 }
  0x40   :  { %327 = vmatpush.bf16.msra.mxu0 %v606_v47  ;;  %699 = vmatpush.bf16.msra.mxu2 %v606_v47  ;;  %v152_v47 = vld [vmem:[#allocation2 + $0xa8] sm:$0xff] }
  0x41   :  { %376 = vmatpush.bf16.msra.mxu1 %v610_v48  ;;  %707 = vmatpush.bf16.msra.mxu3 %v610_v48  ;;  %v153_v48 = vld [vmem:[#allocation2 + $0xd0] sm:$0xff] }
  0x43   :  { %328 = vmatmul.bf16.vlgmr.msra.gmra.mxu0 %v668_v49  ;;  %348 = vmatmul.bf16.vlgmr.msra.gmra.mxu2 %v672_v50 }
  0x44   :  { %377 = vmatmul.bf16.vlgmr.msra.gmra.mxu1 %v668_v49  ;;  %397 = vmatmul.bf16.vlgmr.msra.gmra.mxu3 %v672_v50  ;;  %v138_v50 = vld [vmem:[#allocation2 + $0xe8] sm:$0xff] }
  0x53   :  { %333 = vmatmul.bf16.gmra.mxu0 %v669_v51  ;;  %353 = vmatmul.bf16.gmra.mxu2 %v673_v52 }
  0x54   :  { %382 = vmatmul.bf16.gmra.mxu1 %v669_v51  ;;  %402 = vmatmul.bf16.gmra.mxu3 %v673_v52 }
  0x63   :  { %338 = vmatmul.bf16.gmra.mxu0 %v670_v53  ;;  %358 = vmatmul.bf16.gmra.mxu2 %v674_v54 }
  0x64   :  { %387 = vmatmul.bf16.gmra.mxu1 %v670_v53  ;;  %407 = vmatmul.bf16.gmra.mxu3 %v674_v54  ;;  %v139_v53 = vld [vmem:[#allocation2 + $0xb8] sm:$0xff] }
  0x73   :  { %343 = vmatmul.bf16.gmra.mxu0 %v671_v55  ;;  %363 = vmatmul.bf16.gmra.mxu2 %v675_v56 }
  0x74   :  { %392 = vmatmul.bf16.gmra.mxu1 %v671_v55  ;;  %412 = vmatmul.bf16.gmra.mxu3 %v675_v56 }
  0xc0   :  { %v329_v59 = vpop.f32.mrf.mxu0 }
  0xc1   :  { %v418_v60 = vadd.f32 %v329_v59, %v128_v57  ;;  %v378_v61 = vpop.f32.mrf.mxu1  ;;  %v154_v59 = vld [vmem:[#allocation2 + $0x10] sm:$0xff] }
  0xc2   :  { %v419_v62 = vadd.f32 %v378_v61, %v129_v58 }
  0xc3   :  { %450 = vst [vmem:[#allocation2 + $0xb0] sm:$0xff] %v418_v60  ;;  %v155_v60 = vld [vmem:[#allocation2 + $0x28] sm:$0xff] }
  0xc4   :  { %451 = vst [vmem:[#allocation2] sm:$0xff] %v419_v62  ;;  %v140_v62 = vld [vmem:[#allocation2 + $0x60] sm:$0xff] }
  0xc6   :  { %v349_v1 = vpop.f32.mrf.mxu2 }
  0xc7   :  { %v434_v3 = vadd.f32 %v349_v1, %v144_v63  ;;  %v398_v4 = vpop.f32.mrf.mxu3  ;;  %v141_v1 = vld [vmem:[#allocation2 + $0xf0] sm:$0xff] }
  0xc8   :  { %v435_v6 = vadd.f32 %v398_v4, %v145_v0  ;;  %v331_v7 = vpop.f32.mrf.mxu0 }
  0xc9   :  { %466 = vst [vmem:[#allocation2 + $0x38] sm:$0xff] %v434_v3  ;;  %v420_v8 = vadd.f32 %v331_v7, %v130_v2  ;;  %v380_v9 = vpop.f32.mrf.mxu1  ;;  %v156_v7 = vld [vmem:[#allocation2 + $0xa0] sm:$0xff] }
  0xca   :  { %467 = vst [vmem:[#allocation2 + $0x58] sm:$0xff] %v435_v6  ;;  %v421_v10 = vadd.f32 %v380_v9, %v131_v5 }
  0xcb   :  { %452 = vst [vmem:[#allocation2 + $0xd8] sm:$0xff] %v420_v8  ;;  %v157_v8 = vld [vmem:[#allocation2 + $0xf8] sm:$0xff] }
  0xcc   :  { %453 = vst [vmem:[#allocation2 + $0x18] sm:$0xff] %v421_v10  ;;  %v142_v10 = vld [vmem:[#allocation2 + $0x8] sm:$0xff] }
  0xce   :  { %v351_v13 = vpop.f32.mrf.mxu2 }
  0xcf   :  { %v436_v15 = vadd.f32 %v351_v13, %v146_v11  ;;  %v400_v16 = vpop.f32.mrf.mxu3  ;;  %v143_v13 = vld [vmem:[#allocation2 + $0x78] sm:$0xff] }
  0xd0   :  { %v437_v18 = vadd.f32 %v400_v16, %v147_v12  ;;  %v334_v19 = vpop.f32.mrf.mxu0 }
  0xd1   :  { %468 = vst [vmem:[#allocation2 + $0x40] sm:$0xff] %v436_v15  ;;  %v422_v20 = vadd.f32 %v334_v19, %v132_v14  ;;  %v383_v21 = vpop.f32.mrf.mxu1  ;;  %v158_v19 = vld [vmem:[#allocation2 + $0x20] sm:$0xff] }
  0xd2   :  { %469 = vst [vmem:[#allocation2 + $0xc8] sm:$0xff] %v437_v18  ;;  %v423_v22 = vadd.f32 %v383_v21, %v133_v17 }
  0xd3   :  { %454 = vst [vmem:[#allocation2 + $0x50] sm:$0xff] %v422_v20  ;;  %v159_v20 = vld [vmem:[#allocation2 + $0x98] sm:$0xff] }
  0xd4   :  { %455 = vst [vmem:[#allocation2 + $0x68] sm:$0xff] %v423_v22 }
  0xd6   :  { %v354_v25 = vpop.f32.mrf.mxu2 }
  0xd7   :  { %v438_v27 = vadd.f32 %v354_v25, %v148_v23  ;;  %v403_v28 = vpop.f32.mrf.mxu3 }
  0xd8   :  { %v439_v30 = vadd.f32 %v403_v28, %v149_v24  ;;  %v336_v31 = vpop.f32.mrf.mxu0 }
  0xd9   :  { %470 = vst [vmem:[#allocation2 + $0xe0] sm:$0xff] %v438_v27  ;;  %v424_v32 = vadd.f32 %v336_v31, %v134_v26  ;;  %v385_v33 = vpop.f32.mrf.mxu1 }
  0xda   :  { %471 = vst [vmem:[#allocation2 + $0x90] sm:$0xff] %v439_v30  ;;  %v425_v34 = vadd.f32 %v385_v33, %v135_v29 }
  0xdb   :  { %456 = vst [vmem:[#allocation2 + $0x30] sm:$0xff] %v424_v32 }
  0xdc   :  { %457 = vst [vmem:[#allocation2 + $0x48] sm:$0xff] %v425_v34 }
  0xde   :  { %v356_v37 = vpop.f32.mrf.mxu2 }
  0xdf   :  { %v440_v39 = vadd.f32 %v356_v37, %v150_v35  ;;  %v405_v40 = vpop.f32.mrf.mxu3 }
  0xe0   :  { %v441_v42 = vadd.f32 %v405_v40, %v151_v36  ;;  %v339_v43 = vpop.f32.mrf.mxu0 }
  0xe1   :  { %472 = vst [vmem:[#allocation2 + $0x70] sm:$0xff] %v440_v39  ;;  %v426_v44 = vadd.f32 %v339_v43, %v136_v38  ;;  %v388_v45 = vpop.f32.mrf.mxu1 }
  0xe2   :  { %473 = vst [vmem:[#allocation2 + $0xc0] sm:$0xff] %v441_v42  ;;  %v427_v46 = vadd.f32 %v388_v45, %v137_v41 }
  0xe3   :  { %458 = vst [vmem:[#allocation2 + $0x80] sm:$0xff] %v426_v44 }
  0xe4   :  { %459 = vst [vmem:[#allocation2 + $0x88] sm:$0xff] %v427_v46 }
  0xe6   :  { %v359_v49 = vpop.f32.mrf.mxu2 }
  0xe7   :  { %v442_v51 = vadd.f32 %v359_v49, %v152_v47  ;;  %v408_v52 = vpop.f32.mrf.mxu3 }
  0xe8   :  { %v443_v54 = vadd.f32 %v408_v52, %v153_v48  ;;  %v341_v55 = vpop.f32.mrf.mxu0 }
  0xe9   :  { %474 = vst [vmem:[#allocation2 + $0xa8] sm:$0xff] %v442_v51  ;;  %v428_v56 = vadd.f32 %v341_v55, %v138_v50  ;;  %v390_v57 = vpop.f32.mrf.mxu1 }
  0xea   :  { %475 = vst [vmem:[#allocation2 + $0xd0] sm:$0xff] %v443_v54  ;;  %v429_v58 = vadd.f32 %v390_v57, %v139_v53 }
  0xeb   :  { %460 = vst [vmem:[#allocation2 + $0xe8] sm:$0xff] %v428_v56 }
  0xec   :  { %461 = vst [vmem:[#allocation2 + $0xb8] sm:$0xff] %v429_v58 }
  0xee   :  { %v361_v61 = vpop.f32.mrf.mxu2 }
  0xef   :  { %v444_v63 = vadd.f32 %v361_v61, %v154_v59  ;;  %v410_v0 = vpop.f32.mrf.mxu3 }
  0xf0   :  { %v445_v2 = vadd.f32 %v410_v0, %v155_v60  ;;  %v344_v3 = vpop.f32.mrf.mxu0 }
  0xf1   :  { %476 = vst [vmem:[#allocation2 + $0x10] sm:$0xff] %v444_v63  ;;  %v430_v4 = vadd.f32 %v344_v3, %v140_v62  ;;  %v393_v5 = vpop.f32.mrf.mxu1 }
  0xf2   :  { %477 = vst [vmem:[#allocation2 + $0x28] sm:$0xff] %v445_v2  ;;  %v431_v6 = vadd.f32 %v393_v5, %v141_v1 }
  0xf3   :  { %462 = vst [vmem:[#allocation2 + $0x60] sm:$0xff] %v430_v4 }
  0xf4   :  { %463 = vst [vmem:[#allocation2 + $0xf0] sm:$0xff] %v431_v6 }
  0xf6   :  { %v364_v9 = vpop.f32.mrf.mxu2 }
  0xf7   :  { %v446_v11 = vadd.f32 %v364_v9, %v156_v7  ;;  %v413_v12 = vpop.f32.mrf.mxu3 }
  0xf8   :  { %v447_v14 = vadd.f32 %v413_v12, %v157_v8  ;;  %v346_v15 = vpop.f32.mrf.mxu0 }
  0xf9   :  { %478 = vst [vmem:[#allocation2 + $0xa0] sm:$0xff] %v446_v11  ;;  %v432_v16 = vadd.f32 %v346_v15, %v142_v10  ;;  %v395_v17 = vpop.f32.mrf.mxu1 }
  0xfa   :  { %479 = vst [vmem:[#allocation2 + $0xf8] sm:$0xff] %v447_v14  ;;  %v433_v18 = vadd.f32 %v395_v17, %v143_v13 }
  0xfb   :  { %464 = vst [vmem:[#allocation2 + $0x8] sm:$0xff] %v432_v16 }
  0xfc   :  { %465 = vst [vmem:[#allocation2 + $0x78] sm:$0xff] %v433_v18 }
  0xfe   :  { %v366_v21 = vpop.f32.mrf.mxu2 }
  0xff   :  { %v448_v22 = vadd.f32 %v366_v21, %v158_v19  ;;  %v415_v23 = vpop.f32.mrf.mxu3 }
 0x100   :  { %v449_v24 = vadd.f32 %v415_v23, %v159_v20 }
 0x101   :  { %480 = vst [vmem:[#allocation2 + $0x20] sm:$0xff] %v448_v22 }
 0x102   :  { %481 = vst [vmem:[#allocation2 + $0x98] sm:$0xff] %v449_v24 }
 0x103 PF:  { %v485_v25 = vld [vmem:[#allocation2 + $0xb0] sm:$0xff]  ;;  %v486_v26 = vld [vmem:[#allocation2] sm:$0xff]  ;;  %v487_v27 = vld [vmem:[#allocation2 + $0xd8] sm:$0xff] }
 0x104   :  { %v517_v28 = vpack.c.bf16 %v486_v26, %v485_v25  ;;  %v488_v29 = vld [vmem:[#allocation2 + $0x18] sm:$0xff]  ;;  %v489_v30 = vld [vmem:[#allocation2 + $0x50] sm:$0xff]  ;;  %v490_v31 = vld [vmem:[#allocation2 + $0x68] sm:$0xff] }
 0x105   :  { %v518_v32 = vpack.c.bf16 %v488_v29, %v487_v27  ;;  %v519_v33 = vpack.c.bf16 %v490_v31, %v489_v30  ;;  %v491_v34 = vld [vmem:[#allocation2 + $0x30] sm:$0xff]  ;;  %v492_v35 = vld [vmem:[#allocation2 + $0x48] sm:$0xff]  ;;  %v493_v36 = vld [vmem:[#allocation2 + $0x80] sm:$0xff] }
 0x106   :  { %533 = vst [vmem:[%s847_s4] sm:$0xff] %v517_v28  ;;  %v520_v37 = vpack.c.bf16 %v492_v35, %v491_v34  ;;  %v494_v38 = vld [vmem:[#allocation2 + $0x88] sm:$0xff]  ;;  %v496_v40 = vld [vmem:[#allocation2 + $0xb8] sm:$0xff]  ;;  %v497_v43 = vld [vmem:[#allocation2 + $0x60] sm:$0xff] }
 0x107   :  { %v495_v39 = vld [vmem:[#allocation2 + $0xe8] sm:$0xff]  ;;  %534 = vst [vmem:[%s847_s4 + $0x8] sm:$0xff] %v518_v32  ;;  %v521_v41 = vpack.c.bf16 %v494_v38, %v493_v36  ;;  %v498_v44 = vld [vmem:[#allocation2 + $0xf0] sm:$0xff]  ;;  %v500_v47 = vld [vmem:[#allocation2 + $0x78] sm:$0xff] }
 0x108   :  { %v522_v42 = vpack.c.bf16 %v496_v40, %v495_v39  ;;  %v499_v45 = vld [vmem:[#allocation2 + $0x8] sm:$0xff]  ;;  %535 = vst [vmem:[%s847_s4 + $0x10] sm:$0xff] %v519_v33  ;;  %v523_v46 = vpack.c.bf16 %v498_v44, %v497_v43  ;;  %v501_v48 = vld [vmem:[#allocation2 + $0x38] sm:$0xff]  ;;  %v503_v51 = vld [vmem:[#allocation2 + $0x40] sm:$0xff] }
 0x109   :  { %v502_v49 = vld [vmem:[#allocation2 + $0x58] sm:$0xff]  ;;  %536 = vst [vmem:[%s847_s4 + $0x18] sm:$0xff] %v520_v37  ;;  %v524_v50 = vpack.c.bf16 %v500_v47, %v499_v45  ;;  %v504_v52 = vld [vmem:[#allocation2 + $0xc8] sm:$0xff]  ;;  %v505_v53 = vld [vmem:[#allocation2 + $0xe0] sm:$0xff] }
 0x10a   :  { %537 = vst [vmem:[%s847_s4 + $0x20] sm:$0xff] %v521_v41  ;;  %v525_v54 = vpack.c.bf16 %v502_v49, %v501_v48  ;;  %v506_v55 = vld [vmem:[#allocation2 + $0x90] sm:$0xff]  ;;  %v508_v57 = vld [vmem:[#allocation2 + $0xc0] sm:$0xff]  ;;  %v526_v58 = vpack.c.bf16 %v504_v52, %v503_v51  ;;  %v509_v59 = vld [vmem:[#allocation2 + $0xa8] sm:$0xff] }
 0x10b   :  { %v507_v56 = vld [vmem:[#allocation2 + $0x70] sm:$0xff]  ;;  %538 = vst [vmem:[%s847_s4 + $0x28] sm:$0xff] %v522_v42  ;;  %v527_v61 = vpack.c.bf16 %v506_v55, %v505_v53  ;;  %v512_v63 = vld [vmem:[#allocation2 + $0x28] sm:$0xff]  ;;  %v513_v1 = vld [vmem:[#allocation2 + $0xa0] sm:$0xff] }
 0x10c   :  { %v510_v60 = vld [vmem:[#allocation2 + $0xd0] sm:$0xff]  ;;  %539 = vst [vmem:[%s847_s4 + $0x30] sm:$0xff] %v523_v46  ;;  %v528_v0 = vpack.c.bf16 %v508_v57, %v507_v56  ;;  %v514_v2 = vld [vmem:[#allocation2 + $0xf8] sm:$0xff]  ;;  %v515_v4 = vld [vmem:[#allocation2 + $0x20] sm:$0xff] }
 0x10d   :  { %v511_v62 = vld [vmem:[#allocation2 + $0x10] sm:$0xff]  ;;  %540 = vst [vmem:[%s847_s4 + $0x38] sm:$0xff] %v524_v50  ;;  %v529_v3 = vpack.c.bf16 %v510_v60, %v509_v59  ;;  %v516_v5 = vld [vmem:[#allocation2 + $0x98] sm:$0xff]  ;;  %v531_v7 = vpack.c.bf16 %v514_v2, %v513_v1 }
 0x10e   :  { %541 = vst [vmem:[%s847_s4 + $0x40] sm:$0xff] %v525_v54  ;;  %v530_v6 = vpack.c.bf16 %v512_v63, %v511_v62  ;;  %v532_v8 = vpack.c.bf16 %v516_v5, %v515_v4 }
 0x10f   :  { %542 = vst [vmem:[%s847_s4 + $0x48] sm:$0xff] %v526_v58 }
 0x110   :  { %543 = vst [vmem:[%s847_s4 + $0x50] sm:$0xff] %v527_v61 }
 0x111   :  { %544 = vst [vmem:[%s847_s4 + $0x58] sm:$0xff] %v528_v0 }
 0x112   :  { %545 = vst [vmem:[%s847_s4 + $0x60] sm:$0xff] %v529_v3 }
 0x113   :  { %546 = vst [vmem:[%s847_s4 + $0x68] sm:$0xff] %v530_v6 }
 0x114   :  { %547 = vst [vmem:[%s847_s4 + $0x70] sm:$0xff] %v531_v7 }
 0x115   :  { %548 = vst [vmem:[%s847_s4 + $0x78] sm:$0xff] %v532_v8 }

// kernel: mixhop_forward.3
= control target key start
LH: loop header
LB: loop body
LE: loop exit
PB: predicated region body
PF: predicated region fallthrough
CT: control target
= control target key end

     0   :  { %s1321_s1 = inlined_call_operand.vmem [shape: bf16[128,384], index: 1, kind: input, shape index: {}]   ;;  %s1322_s0 = inlined_call_operand.vmem [shape: bf16[128,128], index: 0, kind: input, shape index: {}]   ;;  %s1323_s2 = inlined_call_operand.vmem [shape: f32[1,384], index: 2, kind: input, shape index: {}]   ;;  %s1324_s3 = inlined_call_operand.vmem [shape: bf16[128,384], index: 3, kind: output, shape index: {}]  }
   0x1   :  { %v874_v0 = vld [vmem:[%s1321_s1 + $0xa8] sm:$0xf]  ;;  %v914_v1 = vld [vmem:[%s1321_s1 + $0xb0] sm:$0xf0]  ;;  %v913_v2 = vld [vmem:[%s1321_s1 + $0xac] sm:$0xf] }
   0x2   :  { %v875_v3 = vor.u32 %v914_v1, %v874_v0  ;;  %v876_v4 = vld [vmem:[%s1321_s1 + $0xb4] sm:$0xf0]  ;;  %v882_v5 = vld [vmem:[%s1321_s1 + $0xb0] sm:$0xf]  ;;  %v915_v6 = vld [vmem:[%s1321_s1 + $0xb8] sm:$0xf0] }
   0x3   :  { %v978_v7 = vor.u32 %v913_v2, %v876_v4  ;;  %v980_v8 = vor.u32 %v915_v6, %v882_v5  ;;  %v862_v9 = vld [vmem:[%s1321_s1 + $0x90] sm:$0xf]  ;;  %v911_v10 = vld [vmem:[%s1321_s1 + $0x98] sm:$0xf0]  ;;  %v910_v11 = vld [vmem:[%s1321_s1 + $0x94] sm:$0xf] }
   0x4   :  { %338 = vmatpush.bf16.msra.mxu0 %v875_v3  ;;  %916 = vmatpush.bf16.msra.mxu3 %v875_v3  ;;  %v863_v12 = vor.u32 %v911_v10, %v862_v9  ;;  %v864_v13 = vld [vmem:[%s1321_s1 + $0x9c] sm:$0xf0]  ;;  %v870_v14 = vld [vmem:[%s1321_s1 + $0x98] sm:$0xf]  ;;  %v912_v15 = vld [vmem:[%s1321_s1 + $0xa0] sm:$0xf0] }
   0x5   :  { %387 = vmatpush.bf16.msra.mxu1 %v978_v7  ;;  %436 = vmatpush.bf16.msra.mxu2 %v980_v8  ;;  %v1002_v16 = vor.u32 %v910_v11, %v864_v13  ;;  %v1004_v17 = vor.u32 %v912_v15, %v870_v14  ;;  %v850_v18 = vld [vmem:[%s1321_s1 + $0x78] sm:$0xf]  ;;  %v908_v19 = vld [vmem:[%s1321_s1 + $0x80] sm:$0xf0]  ;;  %v907_v20 = vld [vmem:[%s1321_s1 + $0x7c] sm:$0xf] }
   0x6   :  { %v852_v21 = vld [vmem:[%s1321_s1 + $0x84] sm:$0xf0]  ;;  %v858_v22 = vld [vmem:[%s1321_s1 + $0x80] sm:$0xf]  ;;  %v909_v23 = vld [vmem:[%s1321_s1 + $0x88] sm:$0xf0]  ;;  %v851_v24 = vor.u32 %v908_v19, %v850_v18 }
   0x7   :  { %v1026_v25 = vor.u32 %v907_v20, %v852_v21  ;;  %v1028_v26 = vor.u32 %v909_v23, %v858_v22  ;;  %v838_v27 = vld [vmem:[%s1321_s1 + $0x60] sm:$0xf]  ;;  %v905_v28 = vld [vmem:[%s1321_s1 + $0x68] sm:$0xf0]  ;;  %v904_v29 = vld [vmem:[%s1321_s1 + $0x64] sm:$0xf] }
   0x8   :  { %339 = vmatpush.bf16.msra.mxu0 %v863_v12  ;;  %917 = vmatpush.bf16.msra.mxu3 %v863_v12  ;;  %v840_v30 = vld [vmem:[%s1321_s1 + $0x6c] sm:$0xf0]  ;;  %v846_v31 = vld [vmem:[%s1321_s1 + $0x68] sm:$0xf]  ;;  %v906_v32 = vld [vmem:[%s1321_s1 + $0x70] sm:$0xf0]  ;;  %v839_v33 = vor.u32 %v905_v28, %v838_v27 }
   0x9   :  { %388 = vmatpush.bf16.msra.mxu1 %v1002_v16  ;;  %437 = vmatpush.bf16.msra.mxu2 %v1004_v17  ;;  %v1050_v34 = vor.u32 %v904_v29, %v840_v30  ;;  %v1052_v35 = vor.u32 %v906_v32, %v846_v31  ;;  %v826_v36 = vld [vmem:[%s1321_s1 + $0x48] sm:$0xf]  ;;  %v902_v37 = vld [vmem:[%s1321_s1 + $0x50] sm:$0xf0]  ;;  %v901_v38 = vld [vmem:[%s1321_s1 + $0x4c] sm:$0xf] }
   0xa   :  { %v828_v39 = vld [vmem:[%s1321_s1 + $0x54] sm:$0xf0]  ;;  %v834_v40 = vld [vmem:[%s1321_s1 + $0x50] sm:$0xf]  ;;  %v903_v41 = vld [vmem:[%s1321_s1 + $0x58] sm:$0xf0]  ;;  %v827_v42 = vor.u32 %v902_v37, %v826_v36 }
   0xb   :  { %v831_v43 = vor.u32 %v901_v38, %v828_v39  ;;  %v1074_v44 = vor.u32 %v903_v41, %v834_v40  ;;  %v814_v45 = vld [vmem:[%s1321_s1 + $0x30] sm:$0xf]  ;;  %v899_v46 = vld [vmem:[%s1321_s1 + $0x38] sm:$0xf0]  ;;  %v898_v47 = vld [vmem:[%s1321_s1 + $0x34] sm:$0xf] }
   0xc   :  { %340 = vmatpush.bf16.msra.mxu0 %v851_v24  ;;  %918 = vmatpush.bf16.msra.mxu3 %v851_v24  ;;  %v816_v48 = vld [vmem:[%s1321_s1 + $0x3c] sm:$0xf0]  ;;  %v822_v49 = vld [vmem:[%s1321_s1 + $0x38] sm:$0xf]  ;;  %v900_v50 = vld [vmem:[%s1321_s1 + $0x40] sm:$0xf0]  ;;  %v815_v51 = vor.u32 %v899_v46, %v814_v45 }
   0xd   :  { %389 = vmatpush.bf16.msra.mxu1 %v1026_v25  ;;  %438 = vmatpush.bf16.msra.mxu2 %v1028_v26  ;;  %v819_v52 = vor.u32 %v898_v47, %v816_v48  ;;  %v1095_v53 = vor.u32 %v900_v50, %v822_v49  ;;  %v802_v54 = vld [vmem:[%s1321_s1 + $0x18] sm:$0xf]  ;;  %v896_v55 = vld [vmem:[%s1321_s1 + $0x20] sm:$0xf0]  ;;  %v895_v56 = vld [vmem:[%s1321_s1 + $0x1c] sm:$0xf] }
   0xe   :  { %v804_v57 = vld [vmem:[%s1321_s1 + $0x24] sm:$0xf0]  ;;  %v810_v58 = vld [vmem:[%s1321_s1 + $0x20] sm:$0xf]  ;;  %v897_v59 = vld [vmem:[%s1321_s1 + $0x28] sm:$0xf0]  ;;  %v803_v60 = vor.u32 %v896_v55, %v802_v54 }
   0xf   :  { %v807_v61 = vor.u32 %v895_v56, %v804_v57  ;;  %v811_v62 = vor.u32 %v897_v59, %v810_v58  ;;  %v790_v63 = vld [vmem:[%s1321_s1] sm:$0xf]  ;;  %v893_v0 = vld [vmem:[%s1321_s1 + $0x8] sm:$0xf0]  ;;  %v892_v1 = vld [vmem:[%s1321_s1 + $0x4] sm:$0xf] }
  0x10   :  { %341 = vmatpush.bf16.msra.mxu0 %v839_v33  ;;  %919 = vmatpush.bf16.msra.mxu3 %v839_v33  ;;  %v792_v2 = vld [vmem:[%s1321_s1 + $0xc] sm:$0xf0]  ;;  %v798_v3 = vld [vmem:[%s1321_s1 + $0x8] sm:$0xf]  ;;  %v894_v4 = vld [vmem:[%s1321_s1 + $0x10] sm:$0xf0]  ;;  %v791_v5 = vor.u32 %v893_v0, %v790_v63 }
  0x11   :  { %390 = vmatpush.bf16.msra.mxu1 %v1050_v34  ;;  %439 = vmatpush.bf16.msra.mxu2 %v1052_v35  ;;  %v795_v6 = vor.u32 %v892_v1, %v792_v2  ;;  %v799_v9 = vor.u32 %v894_v4, %v798_v3  ;;  %v884_v10 = vld [vmem:[%s1322_s0] sm:$0xff]  ;;  %v890_v11 = vld [vmem:[%s1322_s0 + $0x30] sm:$0xff]  ;;  %v885_v12 = vld [vmem:[%s1322_s0 + $0x8] sm:$0xff] }
  0x12   :  { %v891_v13 = vld [vmem:[%s1322_s0 + $0x38] sm:$0xff]  ;;  %v889_v15 = vld [vmem:[%s1322_s0 + $0x28] sm:$0xff] }
  0x13   :  { %v887_v14 = vld [vmem:[%s1322_s0 + $0x18] sm:$0xff] }
  0x14   :  { %342 = vmatpush.bf16.msra.mxu0 %v827_v42  ;;  %920 = vmatpush.bf16.msra.mxu3 %v827_v42 }
  0x15   :  { %391 = vmatpush.bf16.msra.mxu1 %v831_v43  ;;  %440 = vmatpush.bf16.msra.mxu2 %v1074_v44 }
  0x18   :  { %343 = vmatpush.bf16.msra.mxu0 %v815_v51  ;;  %921 = vmatpush.bf16.msra.mxu3 %v815_v51 }
  0x19   :  { %392 = vmatpush.bf16.msra.mxu1 %v819_v52  ;;  %441 = vmatpush.bf16.msra.mxu2 %v1095_v53 }
  0x1c   :  { %344 = vmatpush.bf16.msra.mxu0 %v803_v60  ;;  %922 = vmatpush.bf16.msra.mxu3 %v803_v60 }
  0x1d   :  { %393 = vmatpush.bf16.msra.mxu1 %v807_v61  ;;  %442 = vmatpush.bf16.msra.mxu2 %v811_v62 }
  0x20   :  { %345 = vmatpush.bf16.msra.mxu0 %v791_v5  ;;  %923 = vmatpush.bf16.msra.mxu3 %v791_v5 }
  0x21   :  { %394 = vmatpush.bf16.msra.mxu1 %v795_v6  ;;  %443 = vmatpush.bf16.msra.mxu2 %v799_v9 }
  0x23   :  { %346 = vmatmul.bf16.vlgmr.msra.gmra.mxu0 %v884_v10  ;;  %376 = vmatmul.bf16.vlgmr.msra.gmra.mxu3 %v890_v11 }
  0x24   :  { %924 = vmatpush.bf16.msrb.mxu3 %v978_v7  ;;  %395 = vmatmul.bf16.vlgmr.msra.gmra.mxu1 %v884_v10  ;;  %v886_v7 = vld [vmem:[%s1322_s0 + $0x10] sm:$0xff] }
  0x25   :  { %444 = vmatmul.bf16.vlgmr.msra.gmra.mxu2 %v884_v10 }
  0x28   :  { %925 = vmatpush.bf16.msrb.mxu3 %v1002_v16  ;;  %v632_v16 = vld [vmem:[%s1323_s2] sm:$0x7] }
  0x29   :  { %v1173_v18 = vperm.slane %v632_v16, 1  ;;  %v1177_v24 = vperm.slane %v632_v16, 2 }
  0x2c   :  { %926 = vmatpush.bf16.msrb.mxu3 %v1026_v25 }
  0x30   :  { %927 = vmatpush.bf16.msrb.mxu3 %v1050_v34 }
  0x33   :  { %351 = vmatmul.bf16.gmra.mxu0 %v885_v12  ;;  %381 = vmatmul.bf16.gmra.mxu3 %v891_v13 }
  0x34   :  { %928 = vmatpush.bf16.msrb.mxu3 %v831_v43  ;;  %400 = vmatmul.bf16.gmra.mxu1 %v885_v12 }
  0x35   :  { %449 = vmatmul.bf16.gmra.mxu2 %v885_v12 }
  0x38   :  { %929 = vmatpush.bf16.msrb.mxu3 %v819_v52 }
  0x3c   :  { %930 = vmatpush.bf16.msrb.mxu3 %v807_v61 }
  0x40   :  { %931 = vmatpush.bf16.msrb.mxu3 %v795_v6 }
  0x43   :  { %356 = vmatmul.bf16.gmra.mxu0 %v886_v7  ;;  %425 = vmatmul.bf16.vlgmr.msrb.gmra.mxu3 %v890_v11 }
  0x44   :  { %932 = vmatpush.bf16.msra.mxu3 %v980_v8  ;;  %405 = vmatmul.bf16.gmra.mxu1 %v886_v7  ;;  %v888_v8 = vld [vmem:[%s1322_s0 + $0x20] sm:$0xff] }
  0x45   :  { %454 = vmatmul.bf16.gmra.mxu2 %v886_v7 }
  0x48   :  { %933 = vmatpush.bf16.msra.mxu3 %v1004_v17  ;;  %v1171_v17 = vperm.slane %v632_v16, 0 }
  0x4c   :  { %934 = vmatpush.bf16.msra.mxu3 %v1028_v26 }
  0x50   :  { %935 = vmatpush.bf16.msra.mxu3 %v1052_v35 }
  0x53   :  { %361 = vmatmul.bf16.gmra.mxu0 %v887_v14  ;;  %430 = vmatmul.bf16.gmra.mxu3 %v891_v13 }
  0x54   :  { %936 = vmatpush.bf16.msra.mxu3 %v1074_v44  ;;  %410 = vmatmul.bf16.gmra.mxu1 %v887_v14 }
  0x55   :  { %459 = vmatmul.bf16.gmra.mxu2 %v887_v14 }
  0x58   :  { %937 = vmatpush.bf16.msra.mxu3 %v1095_v53 }
  0x5c   :  { %938 = vmatpush.bf16.msra.mxu3 %v811_v62 }
  0x60   :  { %939 = vmatpush.bf16.msra.mxu3 %v799_v9 }
  0x63   :  { %366 = vmatmul.bf16.gmra.mxu0 %v888_v8  ;;  %474 = vmatmul.bf16.vlgmr.msra.gmra.mxu3 %v890_v11 }
  0x64   :  { %415 = vmatmul.bf16.gmra.mxu1 %v888_v8 }
  0x65   :  { %464 = vmatmul.bf16.gmra.mxu2 %v888_v8 }
  0x73   :  { %371 = vmatmul.bf16.gmra.mxu0 %v889_v15  ;;  %479 = vmatmul.bf16.gmra.mxu3 %v891_v13 }
  0x74   :  { %420 = vmatmul.bf16.gmra.mxu1 %v889_v15 }
  0x75   :  { %469 = vmatmul.bf16.gmra.mxu2 %v889_v15 }
  0xa0   :  { %v347_v19 = vpop.f32.mrf.mxu0 }
  0xa1   :  { %v640_v20 = vadd.f32 %v1171_v17, %v347_v19  ;;  %v396_v21 = vpop.f32.mrf.mxu1 }
  0xa2   :  { %v641_v22 = vadd.f32 %v1173_v18, %v396_v21 }
  0xa4   :  { %v688_v23 = vpack.c.bf16 %v641_v22, %v640_v20 }
  0xa6   :  { %720 = vst [vmem:[%s1324_s3] sm:$0xff] %v688_v23  ;;  %v377_v25 = vpop.f32.mrf.mxu3 }
  0xa7   :  { %v676_v62 = vadd.f32 %v1171_v17, %v377_v25 }
  0xa8   :  { %v445_v26 = vpop.f32.mrf.mxu2  ;;  %v349_v28 = vpop.f32.mrf.mxu0 }
  0xa9   :  { %v642_v27 = vadd.f32 %v1177_v24, %v445_v26  ;;  %v643_v29 = vadd.f32 %v1171_v17, %v349_v28  ;;  %v398_v30 = vpop.f32.mrf.mxu1 }
  0xaa   :  { %v644_v32 = vadd.f32 %v1173_v18, %v398_v30 }
  0xab   :  { %v689_v31 = vpack.c.bf16 %v642_v27, %v642_v27 }
  0xac   :  { %v690_v33 = vpack.c.bf16 %v644_v32, %v643_v29 }
  0xad   :  { %721 = vst [vmem:[%s1324_s3 + $0x8] sm:$0xf] %v689_v31 }
  0xae   :  { %722 = vst [vmem:[%s1324_s3 + $0xc] sm:$0xff] %v690_v33  ;;  %v379_v34 = vpop.f32.mrf.mxu3 }
  0xaf   :  { %v679_v12 = vadd.f32 %v1171_v17, %v379_v34 }
  0xb0   :  { %v447_v35 = vpop.f32.mrf.mxu2  ;;  %v352_v37 = vpop.f32.mrf.mxu0 }
  0xb1   :  { %v645_v36 = vadd.f32 %v1177_v24, %v447_v35  ;;  %v646_v38 = vadd.f32 %v1171_v17, %v352_v37  ;;  %v401_v39 = vpop.f32.mrf.mxu1 }
  0xb2   :  { %v647_v41 = vadd.f32 %v1173_v18, %v401_v39 }
  0xb3   :  { %v691_v40 = vpack.c.bf16 %v645_v36, %v645_v36 }
  0xb4   :  { %v692_v42 = vpack.c.bf16 %v647_v41, %v646_v38 }
  0xb5   :  { %723 = vst [vmem:[%s1324_s3 + $0x14] sm:$0xf] %v691_v40 }
  0xb6   :  { %724 = vst [vmem:[%s1324_s3 + $0x18] sm:$0xff] %v692_v42  ;;  %v382_v43 = vpop.f32.mrf.mxu3 }
  0xb7   :  { %v682_v25 = vadd.f32 %v1171_v17, %v382_v43 }
  0xb8   :  { %v450_v44 = vpop.f32.mrf.mxu2  ;;  %v354_v46 = vpop.f32.mrf.mxu0 }
  0xb9   :  { %v648_v45 = vadd.f32 %v1177_v24, %v450_v44  ;;  %v649_v47 = vadd.f32 %v1171_v17, %v354_v46  ;;  %v403_v48 = vpop.f32.mrf.mxu1 }
  0xba   :  { %v650_v50 = vadd.f32 %v1173_v18, %v403_v48 }
  0xbb   :  { %v693_v49 = vpack.c.bf16 %v648_v45, %v648_v45 }
  0xbc   :  { %v694_v51 = vpack.c.bf16 %v650_v50, %v649_v47 }
  0xbd   :  { %725 = vst [vmem:[%s1324_s3 + $0x20] sm:$0xf] %v693_v49 }
  0xbe   :  { %726 = vst [vmem:[%s1324_s3 + $0x24] sm:$0xff] %v694_v51  ;;  %v384_v52 = vpop.f32.mrf.mxu3 }
  0xbf   :  { %v685_v37 = vadd.f32 %v1171_v17, %v384_v52 }
  0xc0   :  { %v452_v53 = vpop.f32.mrf.mxu2  ;;  %v357_v55 = vpop.f32.mrf.mxu0 }
  0xc1   :  { %v651_v54 = vadd.f32 %v1177_v24, %v452_v53  ;;  %v652_v56 = vadd.f32 %v1171_v17, %v357_v55  ;;  %v406_v57 = vpop.f32.mrf.mxu1 }
  0xc2   :  { %v653_v59 = vadd.f32 %v1173_v18, %v406_v57 }
  0xc3   :  { %v695_v58 = vpack.c.bf16 %v651_v54, %v651_v54 }
  0xc4   :  { %v696_v60 = vpack.c.bf16 %v653_v59, %v652_v56 }
  0xc5   :  { %727 = vst [vmem:[%s1324_s3 + $0x2c] sm:$0xf] %v695_v58 }
  0xc6   :  { %728 = vst [vmem:[%s1324_s3 + $0x30] sm:$0xff] %v696_v60  ;;  %v426_v61 = vpop.f32.mrf.mxu3 }
  0xc7   :  { %v677_v63 = vadd.f32 %v1173_v18, %v426_v61 }
  0xc8   :  { %v455_v0 = vpop.f32.mrf.mxu2  ;;  %v359_v2 = vpop.f32.mrf.mxu0 }
  0xc9   :  { %v654_v1 = vadd.f32 %v1177_v24, %v455_v0  ;;  %v712_v3 = vpack.c.bf16 %v677_v63, %v676_v62  ;;  %v655_v4 = vadd.f32 %v1171_v17, %v359_v2  ;;  %v408_v5 = vpop.f32.mrf.mxu1 }
  0xca   :  { %v656_v9 = vadd.f32 %v1173_v18, %v408_v5 }
  0xcb   :  { %v697_v6 = vpack.c.bf16 %v654_v1, %v654_v1  ;;  %744 = vst [vmem:[%s1324_s3 + $0x90] sm:$0xff] %v712_v3 }
  0xcc   :  { %v698_v10 = vpack.c.bf16 %v656_v9, %v655_v4 }
  0xcd   :  { %729 = vst [vmem:[%s1324_s3 + $0x38] sm:$0xf] %v697_v6 }
  0xce   :  { %730 = vst [vmem:[%s1324_s3 + $0x3c] sm:$0xff] %v698_v10  ;;  %v428_v11 = vpop.f32.mrf.mxu3 }
  0xcf   :  { %v680_v13 = vadd.f32 %v1173_v18, %v428_v11 }
  0xd0   :  { %v457_v7 = vpop.f32.mrf.mxu2  ;;  %v362_v8 = vpop.f32.mrf.mxu0 }
  0xd1   :  { %v657_v14 = vadd.f32 %v1177_v24, %v457_v7  ;;  %v714_v15 = vpack.c.bf16 %v680_v13, %v679_v12  ;;  %v658_v16 = vadd.f32 %v1171_v17, %v362_v8  ;;  %v411_v19 = vpop.f32.mrf.mxu1 }
  0xd2   :  { %v659_v21 = vadd.f32 %v1173_v18, %v411_v19 }
  0xd3   :  { %v699_v20 = vpack.c.bf16 %v657_v14, %v657_v14  ;;  %746 = vst [vmem:[%s1324_s3 + $0x9c] sm:$0xff] %v714_v15 }
  0xd4   :  { %v700_v22 = vpack.c.bf16 %v659_v21, %v658_v16 }
  0xd5   :  { %731 = vst [vmem:[%s1324_s3 + $0x44] sm:$0xf] %v699_v20 }
  0xd6   :  { %732 = vst [vmem:[%s1324_s3 + $0x48] sm:$0xff] %v700_v22  ;;  %v431_v23 = vpop.f32.mrf.mxu3 }
  0xd7   :  { %v683_v26 = vadd.f32 %v1173_v18, %v431_v23 }
  0xd8   :  { %v460_v27 = vpop.f32.mrf.mxu2  ;;  %v364_v29 = vpop.f32.mrf.mxu0 }
  0xd9   :  { %v660_v28 = vadd.f32 %v1177_v24, %v460_v27  ;;  %v716_v30 = vpack.c.bf16 %v683_v26, %v682_v25  ;;  %v661_v31 = vadd.f32 %v1171_v17, %v364_v29  ;;  %v413_v32 = vpop.f32.mrf.mxu1 }
  0xda   :  { %v662_v34 = vadd.f32 %v1173_v18, %v413_v32 }
  0xdb   :  { %v701_v33 = vpack.c.bf16 %v660_v28, %v660_v28  ;;  %748 = vst [vmem:[%s1324_s3 + $0xa8] sm:$0xff] %v716_v30 }
  0xdc   :  { %v702_v35 = vpack.c.bf16 %v662_v34, %v661_v31 }
  0xdd   :  { %733 = vst [vmem:[%s1324_s3 + $0x50] sm:$0xf] %v701_v33 }
  0xde   :  { %734 = vst [vmem:[%s1324_s3 + $0x54] sm:$0xff] %v702_v35  ;;  %v433_v36 = vpop.f32.mrf.mxu3 }
  0xdf   :  { %v686_v38 = vadd.f32 %v1173_v18, %v433_v36 }
  0xe0   :  { %v462_v39 = vpop.f32.mrf.mxu2  ;;  %v367_v41 = vpop.f32.mrf.mxu0 }
  0xe1   :  { %v663_v40 = vadd.f32 %v1177_v24, %v462_v39  ;;  %v718_v42 = vpack.c.bf16 %v686_v38, %v685_v37  ;;  %v664_v43 = vadd.f32 %v1171_v17, %v367_v41  ;;  %v416_v44 = vpop.f32.mrf.mxu1 }
  0xe2   :  { %v665_v46 = vadd.f32 %v1173_v18, %v416_v44 }
  0xe3   :  { %v703_v45 = vpack.c.bf16 %v663_v40, %v663_v40  ;;  %750 = vst [vmem:[%s1324_s3 + $0xb4] sm:$0xff] %v718_v42 }
  0xe4   :  { %v704_v47 = vpack.c.bf16 %v665_v46, %v664_v43 }
  0xe5   :  { %735 = vst [vmem:[%s1324_s3 + $0x5c] sm:$0xf] %v703_v45 }
  0xe6   :  { %736 = vst [vmem:[%s1324_s3 + $0x60] sm:$0xff] %v704_v47  ;;  %v475_v48 = vpop.f32.mrf.mxu3 }
  0xe7   :  { %v678_v50 = vadd.f32 %v1177_v24, %v475_v48 }
  0xe8   :  { %v465_v49 = vpop.f32.mrf.mxu2  ;;  %v369_v52 = vpop.f32.mrf.mxu0 }
  0xe9   :  { %v666_v51 = vadd.f32 %v1177_v24, %v465_v49  ;;  %v713_v53 = vpack.c.bf16 %v678_v50, %v678_v50  ;;  %v667_v54 = vadd.f32 %v1171_v17, %v369_v52  ;;  %v418_v55 = vpop.f32.mrf.mxu1 }
  0xea   :  { %v668_v57 = vadd.f32 %v1173_v18, %v418_v55 }
  0xeb   :  { %v705_v56 = vpack.c.bf16 %v666_v51, %v666_v51  ;;  %745 = vst [vmem:[%s1324_s3 + $0x98] sm:$0xf] %v713_v53 }
  0xec   :  { %v706_v58 = vpack.c.bf16 %v668_v57, %v667_v54 }
  0xed   :  { %737 = vst [vmem:[%s1324_s3 + $0x68] sm:$0xf] %v705_v56 }
  0xee   :  { %738 = vst [vmem:[%s1324_s3 + $0x6c] sm:$0xff] %v706_v58  ;;  %v477_v59 = vpop.f32.mrf.mxu3 }
  0xef   :  { %v681_v61 = vadd.f32 %v1177_v24, %v477_v59 }
  0xf0   :  { %v467_v60 = vpop.f32.mrf.mxu2  ;;  %v372_v63 = vpop.f32.mrf.mxu0 }
  0xf1   :  { %v669_v62 = vadd.f32 %v1177_v24, %v467_v60  ;;  %v715_v0 = vpack.c.bf16 %v681_v61, %v681_v61  ;;  %v670_v1 = vadd.f32 %v1171_v17, %v372_v63  ;;  %v421_v2 = vpop.f32.mrf.mxu1 }
  0xf2   :  { %v671_v4 = vadd.f32 %v1173_v18, %v421_v2 }
  0xf3   :  { %v707_v3 = vpack.c.bf16 %v669_v62, %v669_v62  ;;  %747 = vst [vmem:[%s1324_s3 + $0xa4] sm:$0xf] %v715_v0 }
  0xf4   :  { %v708_v5 = vpack.c.bf16 %v671_v4, %v670_v1 }
  0xf5   :  { %739 = vst [vmem:[%s1324_s3 + $0x74] sm:$0xf] %v707_v3 }
  0xf6   :  { %740 = vst [vmem:[%s1324_s3 + $0x78] sm:$0xff] %v708_v5  ;;  %v480_v6 = vpop.f32.mrf.mxu3 }
  0xf7   :  { %v684_v10 = vadd.f32 %v1177_v24, %v480_v6 }
  0xf8   :  { %v470_v9 = vpop.f32.mrf.mxu2  ;;  %v374_v12 = vpop.f32.mrf.mxu0 }
  0xf9   :  { %v672_v11 = vadd.f32 %v1177_v24, %v470_v9  ;;  %v717_v13 = vpack.c.bf16 %v684_v10, %v684_v10  ;;  %v673_v7 = vadd.f32 %v1171_v17, %v374_v12  ;;  %v423_v14 = vpop.f32.mrf.mxu1 }
  0xfa   :  { %v674_v15 = vadd.f32 %v1173_v18, %v423_v14 }
  0xfb   :  { %v709_v8 = vpack.c.bf16 %v672_v11, %v672_v11  ;;  %749 = vst [vmem:[%s1324_s3 + $0xb0] sm:$0xf] %v717_v13 }
  0xfc   :  { %v710_v16 = vpack.c.bf16 %v674_v15, %v673_v7 }
  0xfd   :  { %741 = vst [vmem:[%s1324_s3 + $0x80] sm:$0xf] %v709_v8 }
  0xfe   :  { %742 = vst [vmem:[%s1324_s3 + $0x84] sm:$0xff] %v710_v16  ;;  %v482_v19 = vpop.f32.mrf.mxu3 }
  0xff   :  { %v687_v17 = vadd.f32 %v1177_v24, %v482_v19 }
 0x100   :  { %v472_v20 = vpop.f32.mrf.mxu2 }
 0x101   :  { %v675_v21 = vadd.f32 %v1177_v24, %v472_v20  ;;  %v719_v18 = vpack.c.bf16 %v687_v17, %v687_v17 }
 0x103   :  { %v711_v22 = vpack.c.bf16 %v675_v21, %v675_v21  ;;  %751 = vst [vmem:[%s1324_s3 + $0xbc] sm:$0xf] %v719_v18 }
 0x105   :  { %743 = vst [vmem:[%s1324_s3 + $0x8c] sm:$0xf] %v711_v22 }

</bundles_post_ra>
